<compile_context>
chip_gen: v5e
topology: v5e:2x2
jax: 0.10.0
libtpu: 0.0.40
codegen_flags: <defaults>
</compile_context>

<pallas_src>
import functools

import jax
import jax.numpy as jnp
from jax.experimental import pallas as pl
from jax.experimental.pallas import tpu as pltpu


LANE = 128  # vreg lane width / output-channel padding target


def _round_up(x, m):
    return -(-x // m) * m


# ----------------------------- Pallas kernel -------------------------------
def _matmul_bias_act_kernel(a_ref, b_ref, bias_ref, o_ref, *, slope):
    """One M-tile of: out = act(A @ B + bias).  A,B are bf16; accumulate f32."""
    acc = jnp.dot(a_ref[...], b_ref[...], preferred_element_type=jnp.float32)
    acc = acc + bias_ref[...]                       # bias_ref: (1, 128) broadcast
    if slope is not None:                           # fused LeakyReLU(negative_slope)
        acc = jnp.where(acc >= 0, acc, slope * acc)
    o_ref[...] = acc.astype(o_ref.dtype)


# --------------------------- conv = im2col + matmul -------------------------
def _extract_patches(x_nhwc, k, stride, pad):
    """im2col: (N, H, W, C) -> (N, Ho, Wo, k*k*C) with (kh, kw, C) ordering."""
    n, h, w, c = x_nhwc.shape
    xp = jnp.pad(x_nhwc, ((0, 0), (pad, pad), (pad, pad), (0, 0)))
    ho = (h + 2 * pad - k) // stride + 1
    wo = (w + 2 * pad - k) // stride + 1
    cols = []
    for kh in range(k):
        for kw in range(k):
            cols.append(
                xp[:, kh: kh + stride * ho: stride, kw: kw + stride * wo: stride, :]
            )
    patches = jnp.concatenate(cols, axis=-1)        # (N, Ho, Wo, k*k*C)
    return patches, ho, wo


def conv2d_pallas(x_nhwc, layer):
    """Conv2d (PyTorch semantics) with optional fused LeakyReLU.

    `layer` carries the weight already reshaped to (K_pad, 128) bf16 and the
    bias already padded to (1, 128) f32 (done once in __init__).
    """
    n = x_nhwc.shape[0]
    k, stride, pad = layer["k"], layer["stride"], layer["pad"]
    K, K_pad, cout = layer["K"], layer["K_pad"], layer["cout"]
    slope = layer["slope"]

    patches, ho, wo = _extract_patches(x_nhwc.astype(jnp.bfloat16), k, stride, pad)
    M = n * ho * wo
    A = patches.reshape(M, K)
    if K_pad != K:
        A = jnp.pad(A, ((0, 0), (0, K_pad - K)))

    # Collapse the M grid: a single whole-M block (everything is trivially
    # VMEM resident at these sizes), or two blocks for large M so the two
    # TensorCores of a v7x megacore each take half the rows.
    nb = 2 if M >= 256 else 1
    m_pad = _round_up(M, 16 * nb)                   # 16-row sublane pack for bf16
    if m_pad != M:
        A = jnp.pad(A, ((0, m_pad - M), (0, 0)))
    tm = m_pad // nb

    # Intermediate activations stay bf16 (fed straight into the next im2col);
    # the final (no-activation) layer is emitted in f32.
    out_dtype = jnp.bfloat16 if slope is not None else jnp.float32

    kernel = functools.partial(_matmul_bias_act_kernel, slope=slope)
    out = pl.pallas_call(
        kernel,
        out_shape=jax.ShapeDtypeStruct((m_pad, LANE), out_dtype),
        grid=(nb,),
        in_specs=[
            pl.BlockSpec((tm, K_pad), lambda i: (i, 0)),    # A tile (bf16)
            pl.BlockSpec((K_pad, LANE), lambda i: (0, 0)),  # full padded weight
            pl.BlockSpec((1, LANE), lambda i: (0, 0)),      # padded bias
        ],
        out_specs=pl.BlockSpec((tm, LANE), lambda i: (i, 0)),
        compiler_params=pltpu.CompilerParams(dimension_semantics=("parallel",)),
    )(A, layer["w"], layer["b"])

    # Drop the padded rows / padded output channels, restore NHWC.
    return out[:M, :cout].reshape(n, ho, wo, cout)


# ------------------------------- the module --------------------------------
class DiscriminatorPallas:
    """JAX/Pallas port of the PyTorch DCGAN Discriminator.

    `image_size` is the base channel multiplier (as in the PyTorch module);
    the spatial input size must be 64x64 so the final 4x4 valid conv yields
    a 1x1 map.
    """

    def __init__(self, z_dim=20, image_size=8, key=jax.random.PRNGKey(0)):
        del z_dim  # unused by the discriminator, kept for signature parity
        ndf = image_size
        # (cout, cin, stride, pad, lrelu_slope) -- slope 0.1 matches the
        # reference module (nn.LeakyReLU(0.1)).
        specs = [
            (ndf, 1, 2, 1, 0.1),          # layer1
            (ndf * 2, ndf, 2, 1, 0.1),    # layer2
            (ndf * 4, ndf * 2, 2, 1, 0.1),  # layer3
            (ndf * 8, ndf * 4, 2, 1, 0.1),  # layer4
            (1, ndf * 8, 1, 0, None),     # last (no activation)
        ]
        self.layers = []
        k = 4
        for (cout, cin, stride, pad, slope) in specs:
            key, kw_, kb_ = jax.random.split(key, 3)
            w = 0.02 * jax.random.normal(kw_, (cout, cin, k, k), dtype=jnp.float32)
            b = 0.02 * jax.random.normal(kb_, (cout,), dtype=jnp.float32)

            # Hoisted (done once): reorder weight to (kh, kw, Cin, Cout) to
            # match the im2col patch ordering, flatten to (K, Cout), then pad
            # K to a multiple of 128 and Cout to 128 lanes; cast to bf16.
            K = k * k * cin
            K_pad = _round_up(K, LANE)
            B = jnp.transpose(w, (2, 3, 1, 0)).reshape(K, cout)
            B = jnp.pad(B, ((0, K_pad - K), (0, LANE - cout))).astype(jnp.bfloat16)
            bias = jnp.pad(b.reshape(1, cout), ((0, 0), (0, LANE - cout)))
            bias = bias.astype(jnp.float32)

            self.layers.append(dict(
                w=B, b=bias, k=k, stride=stride, pad=pad,
                cin=cin, cout=cout, K=K, K_pad=K_pad, slope=slope,
            ))

    def __call__(self, x_nchw):
        # NCHW (PyTorch convention) -> NHWC for the TPU kernels
        out = jnp.transpose(x_nchw, (0, 2, 3, 1))
        for layer in self.layers:
            out = conv2d_pallas(out, layer)
        # back to NCHW, final logits in f32
        return jnp.transpose(out, (0, 3, 1, 2)).astype(jnp.float32)


# ----------------------------------- main -----------------------------------
if __name__ == "__main__":
    key = jax.random.PRNGKey(0)
    k_model, k_x = jax.random.split(key)

    # Small channel base (image_size=8 -> channels 8,16,32,64), batch=2,
    # spatial 64x64 (required so the final 4x4 valid conv yields a 1x1 map).
    model = DiscriminatorPallas(z_dim=20, image_size=8, key=k_model)
    x = jax.random.normal(k_x, (2, 1, 64, 64), dtype=jnp.float32)  # NCHW input

    y = model(x)
    y = jax.block_until_ready(y)
    assert y.shape == (2, 1, 1, 1), y.shape
    assert jnp.all(jnp.isfinite(y))
    print("KERNEL_OK")
</pallas_src>

<mosaic_0001>
module attributes {stable_mosaic.version = 11 : i64} {
  func.func @_matmul_bias_act_kernel(%arg0: i32, %arg1: memref<1024x128xbf16, #tpu.memory_space<vmem>>, %arg2: memref<128x128xbf16, #tpu.memory_space<vmem>>, %arg3: memref<1x128xf32, #tpu.memory_space<vmem>>, %arg4: memref<1024x128xbf16, #tpu.memory_space<vmem>>) attributes {dimension_semantics = [#tpu.dimension_semantics<parallel>], iteration_bounds = array<i64: 2>, scalar_prefetch = 0 : i64, scratch_operands = 0 : i64, tpu.core_type = #tpu.core_type<tc>, window_params = [{transform_indices = @transform_0, window_bounds = array<i64: 1024, 128>}, {pipeline_mode = #tpu.pipeline_mode<synchronous>, transform_indices = @transform_1, window_bounds = array<i64: 128, 128>}, {pipeline_mode = #tpu.pipeline_mode<synchronous>, transform_indices = @transform_2, window_bounds = array<i64: 1, 128>}, {transform_indices = @transform_3, window_bounds = array<i64: 1024, 128>}]} {
    %c0 = arith.constant 0 : index
    %c0_0 = arith.constant 0 : index
    %0 = vector.load %arg1[%c0, %c0_0] : memref<1024x128xbf16, #tpu.memory_space<vmem>>, vector<1024x128xbf16>
    %c0_1 = arith.constant 0 : index
    %c0_2 = arith.constant 0 : index
    %1 = vector.load %arg2[%c0_1, %c0_2] : memref<128x128xbf16, #tpu.memory_space<vmem>>, vector<128x128xbf16>
    %cst = arith.constant dense<0.000000e+00> : vector<1024x128xf32>
    %2 = tpu.matmul %0, %1, %cst {dimension_numbers = #tpu.dot_dimension_numbers<[1], [0], [0], [1], [0, 0, 1, 1], [], []>} : vector<1024x128xbf16>, vector<128x128xbf16>, vector<1024x128xf32> -> vector<1024x128xf32>
    %c0_3 = arith.constant 0 : index
    %c0_4 = arith.constant 0 : index
    %3 = vector.load %arg3[%c0_3, %c0_4] : memref<1x128xf32, #tpu.memory_space<vmem>>, vector<1x128xf32>
    %4 = vector.broadcast %3 : vector<1x128xf32> to vector<1024x128xf32>
    %5 = arith.addf %2, %4 : vector<1024x128xf32>
    %cst_5 = arith.constant 0.000000e+00 : f32
    %6 = vector.broadcast %cst_5 : f32 to vector<1024x128xf32>
    %7 = arith.cmpf oge, %5, %6 : vector<1024x128xf32>
    %cst_6 = arith.constant 1.000000e-01 : f32
    %8 = vector.broadcast %cst_6 : f32 to vector<1024x128xf32>
    %9 = arith.mulf %8, %5 : vector<1024x128xf32>
    %10 = arith.select %7, %5, %9 : vector<1024x128xi1>, vector<1024x128xf32>
    %11 = arith.truncf %10 : vector<1024x128xf32> to vector<1024x128xbf16>
    %c0_7 = arith.constant 0 : index
    %c0_8 = arith.constant 0 : index
    %12 = vector.load %arg4[%c0_7, %c0_8] : memref<1024x128xbf16, #tpu.memory_space<vmem>>, vector<1024x128xbf16>
    tpu.vector_store %arg4[%c0_7, %c0_8], %11 {strides = array<i32>} : memref<1024x128xbf16, #tpu.memory_space<vmem>>, vector<1024x128xbf16>,
    return
  }
  func.func @transform_0(%arg0: i32) -> (i32, i32) {
    %c0_i32 = arith.constant 0 : i32
    %c0_i32_0 = arith.constant 0 : i32
    return %arg0, %c0_i32 : i32, i32
  }
  func.func @transform_1(%arg0: i32) -> (i32, i32) {
    %c0_i32 = arith.constant 0 : i32
    %c0_i32_0 = arith.constant 0 : i32
    %c0_i32_1 = arith.constant 0 : i32
    return %c0_i32, %c0_i32_0 : i32, i32
  }
  func.func @transform_2(%arg0: i32) -> (i32, i32) {
    %c0_i32 = arith.constant 0 : i32
    %c0_i32_0 = arith.constant 0 : i32
    %c0_i32_1 = arith.constant 0 : i32
    return %c0_i32, %c0_i32_0 : i32, i32
  }
  func.func @transform_3(%arg0: i32) -> (i32, i32) {
    %c0_i32 = arith.constant 0 : i32
    %c0_i32_0 = arith.constant 0 : i32
    return %arg0, %c0_i32 : i32, i32
  }
}

</mosaic_0001>

<bundles_post_ra>
// kernel: tpu_custom_call.1
= control target key start
LH: loop header
LB: loop body
LE: loop exit
PB: predicated region body
PF: predicated region fallthrough
CT: control target
= control target key end

     0   :  { %8 = vsyncpa [#allocation3], 0  ;;  %s3283_s0 = inlined_call_operand.hbm [shape: bf16[2048,128], index: 0, kind: input, shape index: {}]   ;;  %s3284_s1 = inlined_call_operand.hbm [shape: bf16[128,128], index: 1, kind: input, shape index: {}]   ;;  %s3285_s2 = inlined_call_operand.vmem [shape: f32[1,128], index: 2, kind: input, shape index: {}]   ;;  %s3286_s3 = inlined_call_operand.hbm [shape: bf16[2048,128], index: 3, kind: output, shape index: {}]  }
   0x1   :  { %10 = vsyncpa [#allocation3 + $0x1], 0 }
   0x2   :  { %11 = vsyncpa [#allocation6], 0 }
   0x3   :  { %12 = vsyncpa [#allocation4], 0 }
   0x4   :  { %14 = vsyncpa [#allocation4 + $0x1], 0  ;;  %s2863_s12 = smov 0   ;;  %s2865_s13 = smov 0  }
   0x5   :  { %s2867_s14 = smov 0   ;;  %s2869_s15 = smov 0  }
   0x6 LB: > { %s2884_s16 = sadd.s32 4294967295, %s2836_s15   ;;  %s1858_s17 = sadd.s32 4294967294, %s2836_s15   ;;  %s2836_s15 = sphi %s2869_s15, %s3296_s15   ;;  %s2832_s14 = sphi %s2867_s14, %s3295_s14   ;;  %s2828_s13 = sphi %s2865_s13, %s3294_s13   ;;  %s2824_s12 = sphi %s2863_s12, %s3293_s12  }
   0x7   : > { %p40_p0 = scmp.ne.s32.totalorder %s2828_s13, %s2824_s12  ;;  %p41_p1 = scmp.eq.s32.totalorder %s2884_s16, 0 }
   0x8   : > { %p106_p2 = scmp.eq.s32.totalorder %s2884_s16, 1  ;;  %p112_p3 = scmp.eq.s32.totalorder %s1858_s17, 1 }
   0x9   : > { %p2893_p4 = por %p41_p1, %p40_p0  ;;  %p1859_p5 = scmp.ge.s32.totalorder %s2836_s15, 1 }
   0xa   : > { %p2898_p6 = por %p112_p3, %p40_p0  ;;  %p119_p7 = scmp.lt.s32.totalorder %s2836_s15, 3 }
   0xb   : > { %s130_s22 = sshll.u32 %s3284_s1, 4  ;;  %s2838_s24 = smov [#allocation5]   ;;  %s131_s22 = int_to_ptr.hbm [resolvable:$true] %s130_s22 }
   0xc   : > { %p2906_p8 = pnand %p1859_p5, %p119_p7  ;;  %s132_s25 = sshll.u32 %s2838_s24, 4  ;;  %s133_s25 = int_to_ptr.vmem [resolvable:$true] %s132_s25 }
   0xd   : > { %s2916_s26 = sadd.s32 1, %s2836_s15   ;;  %s2839_s27 = smov 64  }
   0xe   : > { %p2651_p9 = pneg %p2906_p8  ;;  %s2840_s28 = smov 4  }
   0xf   : > { %s24_s29 = ssub.s32 %s2836_s15, %s2916_s26  ;;  %s27_s30 = sadd.s32 1, %s2832_s14 }
  0x10   : > { %p2652_p10 = pnand %p2651_p9, %p41_p1  ;;  %p25_p12 = scmp.eq.s32.totalorder %s24_s29, 0 }
  0x11   : > { %p34_p13 = scmp.ne.s32.totalorder %s2832_s14, %s2828_s13  ;;  %p35_p0 = scmp.eq.s32.totalorder %s2836_s15, 0 }
  0x12   : > { %2654 = dma.hbm_to_vmem [thread:$0]  (!%p2652_p10), %s131_s22, 1024, %s133_s25, [#allocation6], %s2839_s27, %s2839_s27, %s2840_s28  }
  0x13   : > { %s2928_s4 = scalar_select %p25_p12, %s2832_s14, %s27_s30  }
  0x14   : > { %p2932_p3 = por %p106_p2, %p34_p13  ;;  %p2664_p5 = scmp.lt.s32.totalorder %s2836_s15, 2 }
  0x15   : > { %s149_s6 = sand.u32 1, %s2832_s14   ;;  %s2162_s7 = sshll.u32 %s2836_s15, 9 }
  0x16   : > { %p36_p7 = por %p35_p0, %p34_p13  ;;  %s1862_s8 = sshll.u32 %s149_s6, 9 }
  0x17   : > { %s158_s11 = scalar_lea.hbm %s3283_s0, %s2162_s7  ;;  %s153_s20 = scalar_lea.vmem [#allocation2], %s1862_s8 }
  0x18   : > { %s159_s17 = sshll.u32 %s158_s11, 4  ;;  %s161_s21 = sshll.u32 %s153_s20, 4  ;;  %s160_s17 = int_to_ptr.hbm [resolvable:$true] %s159_s17  ;;  %s162_s21 = int_to_ptr.vmem [resolvable:$true] %s161_s21 }
  0x19   : > { %p2942_p9 = pnand %p2664_p5, %p36_p7  ;;  %s150_s24 = scalar_lea.sflag [#allocation3], %s149_s6 }
  0x1a   : > { %s2736_s25 = sshra.s32 %s160_s17, 4  ;;  %s2743_s8 = scalar_lea.hbm %s3283_s0, 1024  ;;  %s2737_s25 = int_to_ptr.hbm [resolvable:$true] %s2736_s25 }
  0x1b   : > { %s2738_s29 = scalar_lea.hbm %s2737_s25, 512  ;;  %p2740_p10 = pneg %p2942_p9 }
  0x1c   : > { %p2739_p2 = scmp.ne.s32.totalorder %s2737_s25, %s2738_s29  ;;  %p2744_p0 = scmp.lt.s32.totalorder %s2737_s25, %s3283_s0 }
  0x1d   : > { %p2745_p5 = scmp.lt.s32.totalorder %s2743_s8, %s2738_s29 }
  0x1e   : > { %p2741_p12 = pnand %p2740_p10, %p2739_p2 }
  0x1f   : > { %p2746_p7 = por %p2745_p5, %p2744_p0 }
  0x20   : > { %p2742_p13 = pneg %p2741_p12 }
  0x22   : > { %p2747_p11 = pnand %p2746_p7, %p2742_p13 }
  0x24   : > { %2750 = shalt.err (!%p2747_p11)
}
  0x25   : > { %2658 = dma.hbm_to_vmem [thread:$0]  (!%p2942_p9), %s160_s17, 8192, %s162_s21, %s150_s24, %s2839_s27, %s2839_s27, %s2840_s28  }
  0x26   : > { %173 = sbr.rel (%p2906_p8) target bundleno = 471 (0x1d7), region = 32  ;;  %s2962_s6 = sand.u32 (!%p2906_p8), 1, %s2828_s13  }
  0x27   : > { %s1866_s11 = sshll.u32 (!%p2906_p8), %s2962_s6, 9  ;;  %s176_s20 = scalar_lea.sflag (!%p2906_p8), [#allocation3], %s2962_s6 }
  0x28   : > { %s2968_s25 = scalar_lea.vmem (!%p2906_p8), [#allocation2], %s1866_s11 }
  0x2b   : > { %2811 = dma.done.wait (%p2893_p4), %s176_s20, 8192  }
  0x2c   : > { %2813 = vsyncadd (%p2893_p4), %s176_s20, 4294959104 }
  0x2d   : > { %2815 = dma.done.wait (%p41_p1), [#allocation6], 1024  }
  0x2e   : > { %2817 = vsyncadd (%p41_p1), [#allocation6], 4294966272  ;;  %v2234_v0 = vld [vmem:[#allocation5 + $0x38] sm:$0xff]  ;;  %v2233_v1 = vld [vmem:[#allocation5 + $0x30] sm:$0xff]  ;;  %s3029_s27 = scalar_lea.vmem [#allocation7], %s1866_s11  ;;  %s2235_s21 = sshll.u32 %s2884_s16, 9 }
  0x2f   : > { %790 = vmatpush.bf16.msra.mxu0 %v2234_v0  ;;  %2619 = vmatpush.bf16.msra.mxu1 %v2234_v0  ;;  %v2232_v2 = vld [vmem:[#allocation5 + $0x28] sm:$0xff]  ;;  %v2231_v3 = vld [vmem:[#allocation5 + $0x20] sm:$0xff]  ;;  %v2230_v4 = vld [vmem:[#allocation5 + $0x18] sm:$0xff]  ;;  %s1771_s16 = scalar_lea.hbm %s3286_s3, %s2235_s21  ;;  %s1772_s29 = sshll.u32 %s3029_s27, 4  ;;  %s1773_s29 = int_to_ptr.vmem [resolvable:$true] %s1772_s29 }
  0x30   : > { %2620 = vmatpush.bf16.msra.mxu2 %v2234_v0  ;;  %2621 = vmatpush.bf16.msra.mxu3 %v2234_v0  ;;  %v2229_v5 = vld [vmem:[#allocation5 + $0x10] sm:$0xff]  ;;  %v2228_v6 = vld [vmem:[#allocation5 + $0x8] sm:$0xff]  ;;  %v2227_v7 = vld [vmem:[#allocation5] sm:$0xff]  ;;  %s1774_s30 = sshll.u32 %s1771_s16, 4  ;;  %s1760_s7 = scalar_lea.sflag [#allocation4], %s2962_s6  ;;  %s1775_s30 = int_to_ptr.hbm [resolvable:$true] %s1774_s30 }
  0x31   : > { %v2163_v8 = vld [vmem:[%s2968_s25] sm:$0xff]  ;;  %v2164_v12 = vld [vmem:[%s2968_s25 + $0x8] sm:$0xff]  ;;  %v2165_v16 = vld [vmem:[%s2968_s25 + $0x10] sm:$0xff]  ;;  %s2780_s8 = sshra.s32 %s1775_s30, 4  ;;  %s2786_s20 = scalar_lea.hbm %s3286_s3, 1024  ;;  %s2781_s8 = int_to_ptr.hbm [resolvable:$true] %s2780_s8 }
  0x32   : > { %v2179_v9 = vld [vmem:[%s2968_s25 + $0x80] sm:$0xff]  ;;  %v2180_v13 = vld [vmem:[%s2968_s25 + $0x88] sm:$0xff]  ;;  %v2181_v17 = vld [vmem:[%s2968_s25 + $0x90] sm:$0xff]  ;;  %s2782_s9 = scalar_lea.hbm %s2781_s8, 512  ;;  %p2787_p11 = scmp.lt.s32.totalorder %s2781_s8, %s3286_s3 }
  0x33   : > { %791 = vmatpush.bf16.msra.mxu0 %v2233_v1  ;;  %2622 = vmatpush.bf16.msra.mxu1 %v2233_v1  ;;  %v2195_v10 = vld [vmem:[%s2968_s25 + $0x100] sm:$0xff]  ;;  %v2196_v14 = vld [vmem:[%s2968_s25 + $0x108] sm:$0xff]  ;;  %v2197_v18 = vld [vmem:[%s2968_s25 + $0x110] sm:$0xff]  ;;  %p2783_p1 = scmp.ne.s32.totalorder %s2781_s8, %s2782_s9  ;;  %p2788_p9 = scmp.lt.s32.totalorder %s2786_s20, %s2782_s9 }
  0x34   : > { %2623 = vmatpush.bf16.msra.mxu2 %v2233_v1  ;;  %2624 = vmatpush.bf16.msra.mxu3 %v2233_v1  ;;  %v2211_v11 = vld [vmem:[%s2968_s25 + $0x180] sm:$0xff]  ;;  %v2212_v15 = vld [vmem:[%s2968_s25 + $0x188] sm:$0xff]  ;;  %v2213_v19 = vld [vmem:[%s2968_s25 + $0x190] sm:$0xff] }
  0x35   : > { %v2166_v20 = vld [vmem:[%s2968_s25 + $0x18] sm:$0xff]  ;;  %v2167_v24 = vld [vmem:[%s2968_s25 + $0x20] sm:$0xff]  ;;  %v2168_v28 = vld [vmem:[%s2968_s25 + $0x28] sm:$0xff]  ;;  %p2784_p4 = pnand %p2783_p1, %p2932_p3  ;;  %p2789_p2 = por %p2788_p9, %p2787_p11 }
  0x36   : > { %v2182_v21 = vld [vmem:[%s2968_s25 + $0x98] sm:$0xff]  ;;  %v2183_v25 = vld [vmem:[%s2968_s25 + $0xa0] sm:$0xff]  ;;  %v2184_v29 = vld [vmem:[%s2968_s25 + $0xa8] sm:$0xff] }
  0x37   : > { %792 = vmatpush.bf16.msra.mxu0 %v2232_v2  ;;  %2625 = vmatpush.bf16.msra.mxu1 %v2232_v2  ;;  %v2198_v22 = vld [vmem:[%s2968_s25 + $0x118] sm:$0xff]  ;;  %v2199_v26 = vld [vmem:[%s2968_s25 + $0x120] sm:$0xff]  ;;  %v2200_v30 = vld [vmem:[%s2968_s25 + $0x128] sm:$0xff]  ;;  %p2785_p8 = pneg %p2784_p4 }
  0x38   : > { %2626 = vmatpush.bf16.msra.mxu2 %v2232_v2  ;;  %2627 = vmatpush.bf16.msra.mxu3 %v2232_v2  ;;  %v2214_v23 = vld [vmem:[%s2968_s25 + $0x198] sm:$0xff]  ;;  %v2215_v27 = vld [vmem:[%s2968_s25 + $0x1a0] sm:$0xff]  ;;  %v2216_v31 = vld [vmem:[%s2968_s25 + $0x1a8] sm:$0xff] }
  0x39   : > { %v2169_v32 = vld [vmem:[%s2968_s25 + $0x30] sm:$0xff]  ;;  %v2170_v36 = vld [vmem:[%s2968_s25 + $0x38] sm:$0xff]  ;;  %v2171_v40 = vld [vmem:[%s2968_s25 + $0x40] sm:$0xff]  ;;  %p2790_p10 = pnand %p2789_p2, %p2785_p8 }
  0x3a   : > { %v2185_v33 = vld [vmem:[%s2968_s25 + $0xb0] sm:$0xff]  ;;  %v2186_v37 = vld [vmem:[%s2968_s25 + $0xb8] sm:$0xff]  ;;  %v2187_v41 = vld [vmem:[%s2968_s25 + $0xc0] sm:$0xff] }
  0x3b   : > { %793 = vmatpush.bf16.msra.mxu0 %v2231_v3  ;;  %2628 = vmatpush.bf16.msra.mxu1 %v2231_v3  ;;  %v2201_v34 = vld [vmem:[%s2968_s25 + $0x130] sm:$0xff]  ;;  %v2202_v38 = vld [vmem:[%s2968_s25 + $0x138] sm:$0xff]  ;;  %v2203_v44 = vld [vmem:[%s2968_s25 + $0x140] sm:$0xff] }
  0x3c   : > { %2629 = vmatpush.bf16.msra.mxu2 %v2231_v3  ;;  %2630 = vmatpush.bf16.msra.mxu3 %v2231_v3  ;;  %v2217_v35 = vld [vmem:[%s2968_s25 + $0x1b0] sm:$0xff]  ;;  %v2218_v39 = vld [vmem:[%s2968_s25 + $0x1b8] sm:$0xff]  ;;  %v2219_v45 = vld [vmem:[%s2968_s25 + $0x1c0] sm:$0xff] }
  0x3d   : > { %v3017_v46 = vld [vmem:[%s3285_s2] ss:$0 sm:$0xff] }
  0x3f   : > { %794 = vmatpush.bf16.msra.mxu0 %v2230_v4  ;;  %2631 = vmatpush.bf16.msra.mxu1 %v2230_v4 }
  0x40   : > { %2632 = vmatpush.bf16.msra.mxu2 %v2230_v4  ;;  %2633 = vmatpush.bf16.msra.mxu3 %v2230_v4 }
  0x43   : > { %795 = vmatpush.bf16.msra.mxu0 %v2229_v5  ;;  %2634 = vmatpush.bf16.msra.mxu1 %v2229_v5 }
  0x44   : > { %2635 = vmatpush.bf16.msra.mxu2 %v2229_v5  ;;  %2636 = vmatpush.bf16.msra.mxu3 %v2229_v5 }
  0x47   : > { %796 = vmatpush.bf16.msra.mxu0 %v2228_v6  ;;  %2637 = vmatpush.bf16.msra.mxu1 %v2228_v6 }
  0x48   : > { %2638 = vmatpush.bf16.msra.mxu2 %v2228_v6  ;;  %2639 = vmatpush.bf16.msra.mxu3 %v2228_v6  ;;  %v2172_v6 = vld [vmem:[%s2968_s25 + $0x48] sm:$0xff] }
  0x4b   : > { %797 = vmatpush.bf16.msra.mxu0 %v2227_v7  ;;  %2640 = vmatpush.bf16.msra.mxu1 %v2227_v7 }
  0x4c   : > { %2641 = vmatpush.bf16.msra.mxu2 %v2227_v7  ;;  %2642 = vmatpush.bf16.msra.mxu3 %v2227_v7  ;;  %v2188_v7 = vld [vmem:[%s2968_s25 + $0xc8] sm:$0xff] }
  0x4e   : > { %798 = vmatmul.bf16.vlgmr.msra.gmra.mxu0 %v2163_v8  ;;  %878 = vmatmul.bf16.vlgmr.msra.gmra.mxu1 %v2179_v9 }
  0x4f   : > { %958 = vmatmul.bf16.vlgmr.msra.gmra.mxu2 %v2195_v10  ;;  %1038 = vmatmul.bf16.vlgmr.msra.gmra.mxu3 %v2211_v11 }
  0x5e   : > { %803 = vmatmul.bf16.gmra.mxu0 %v2164_v12  ;;  %883 = vmatmul.bf16.gmra.mxu1 %v2180_v13  ;;  %v2204_v13 = vld [vmem:[%s2968_s25 + $0x148] sm:$0xff] }
  0x5f   : > { %963 = vmatmul.bf16.gmra.mxu2 %v2196_v14  ;;  %1043 = vmatmul.bf16.gmra.mxu3 %v2212_v15  ;;  %v2220_v14 = vld [vmem:[%s2968_s25 + $0x1c8] sm:$0xff] }
  0x6e   : > { %808 = vmatmul.bf16.gmra.mxu0 %v2165_v16  ;;  %888 = vmatmul.bf16.gmra.mxu1 %v2181_v17 }
  0x6f   : > { %968 = vmatmul.bf16.gmra.mxu2 %v2197_v18  ;;  %1048 = vmatmul.bf16.gmra.mxu3 %v2213_v19 }
  0x7e   : > { %813 = vmatmul.bf16.gmra.mxu0 %v2166_v20  ;;  %893 = vmatmul.bf16.gmra.mxu1 %v2182_v21 }
  0x7f   : > { %973 = vmatmul.bf16.gmra.mxu2 %v2198_v22  ;;  %1053 = vmatmul.bf16.gmra.mxu3 %v2214_v23 }
  0x8e   : > { %818 = vmatmul.bf16.gmra.mxu0 %v2167_v24  ;;  %898 = vmatmul.bf16.gmra.mxu1 %v2183_v25 }
  0x8f   : > { %978 = vmatmul.bf16.gmra.mxu2 %v2199_v26  ;;  %1058 = vmatmul.bf16.gmra.mxu3 %v2215_v27 }
  0x9e   : > { %823 = vmatmul.bf16.gmra.mxu0 %v2168_v28  ;;  %903 = vmatmul.bf16.gmra.mxu1 %v2184_v29 }
  0x9f   : > { %983 = vmatmul.bf16.gmra.mxu2 %v2200_v30  ;;  %1063 = vmatmul.bf16.gmra.mxu3 %v2216_v31 }
  0xae   : > { %828 = vmatmul.bf16.gmra.mxu0 %v2169_v32  ;;  %908 = vmatmul.bf16.gmra.mxu1 %v2185_v33 }
  0xaf   : > { %988 = vmatmul.bf16.gmra.mxu2 %v2201_v34  ;;  %1068 = vmatmul.bf16.gmra.mxu3 %v2217_v35 }
  0xbe   : > { %833 = vmatmul.bf16.gmra.mxu0 %v2170_v36  ;;  %913 = vmatmul.bf16.gmra.mxu1 %v2186_v37 }
  0xbf   : > { %993 = vmatmul.bf16.gmra.mxu2 %v2202_v38  ;;  %1073 = vmatmul.bf16.gmra.mxu3 %v2218_v39 }
  0xcb   : > { %v799_v42 = vpop.f32.mrf.mxu0  ;;  %v879_v43 = vpop.f32.mrf.mxu1 }
  0xcc   : > { %v800_v47 = vadd.f32 %v3017_v46, %v799_v42  ;;  %v880_v48 = vadd.f32 %v3017_v46, %v879_v43 }
  0xce   : > { %838 = vmatmul.bf16.gmra.mxu0 %v2171_v40  ;;  %918 = vmatmul.bf16.gmra.mxu1 %v2187_v41  ;;  %v1247_v53 = vmul.f32 0.1, %v800_v47  ;;  %v1279_v54 = vmul.f32 0.1, %v880_v48  ;;  %vm1119_vm0 = vcmp.ge.f32.partialorder %v800_v47, 0.0  ;;  %vm1151_vm1 = vcmp.ge.f32.partialorder %v880_v48, 0.0 }
  0xcf   : > { %998 = vmatmul.bf16.gmra.mxu2 %v2203_v44  ;;  %1078 = vmatmul.bf16.gmra.mxu3 %v2219_v45 }
  0xd0   : > { %v1375_v61 = vsel %vm1119_vm0, %v800_v47, %v1247_v53  ;;  %v1407_v62 = vsel %vm1151_vm1, %v880_v48, %v1279_v54  ;;  %v2173_v47 = vld [vmem:[%s2968_s25 + $0x50] sm:$0xff] }
  0xd1   : > { %v2189_v48 = vld [vmem:[%s2968_s25 + $0xd0] sm:$0xff] }
  0xd2   : > { %v959_v49 = vpop.f32.mrf.mxu2  ;;  %v1039_v50 = vpop.f32.mrf.mxu3  ;;  %v2205_v54 = vld [vmem:[%s2968_s25 + $0x150] sm:$0xff] }
  0xd3   : > { %v801_v51 = vpop.f32.mrf.mxu0  ;;  %v881_v52 = vpop.f32.mrf.mxu1  ;;  %v960_v57 = vadd.f32 %v3017_v46, %v959_v49  ;;  %v1040_v60 = vadd.f32 %v3017_v46, %v1039_v50 }
  0xd4   : > { %v802_v55 = vadd.f32 %v3017_v46, %v801_v51  ;;  %v882_v56 = vadd.f32 %v3017_v46, %v881_v52 }
  0xd5   : > { %v1311_v3 = vmul.f32 0.1, %v960_v57  ;;  %vm1183_vm4 = vcmp.ge.f32.partialorder %v960_v57, 0.0  ;;  %v1343_v8 = vmul.f32 0.1, %v1040_v60  ;;  %vm1215_vm5 = vcmp.ge.f32.partialorder %v1040_v60, 0.0 }
  0xd6   : > { %vm1120_vm2 = vcmp.ge.f32.partialorder %v802_v55, 0.0  ;;  %v1248_v58 = vmul.f32 0.1, %v802_v55  ;;  %vm1152_vm3 = vcmp.ge.f32.partialorder %v882_v56, 0.0  ;;  %v1280_v59 = vmul.f32 0.1, %v882_v56 }
  0xd7   : > { %v1439_v17 = vsel %vm1183_vm4, %v960_v57, %v1311_v3  ;;  %v1471_v18 = vsel %vm1215_vm5, %v1040_v60, %v1343_v8 }
  0xd8   : > { %v1376_v63 = vsel %vm1120_vm2, %v802_v55, %v1248_v58  ;;  %v1408_v0 = vsel %vm1152_vm3, %v882_v56, %v1280_v59  ;;  %v2221_v55 = vld [vmem:[%s2968_s25 + $0x1d0] sm:$0xff] }
  0xd9   : > { %v2239_v1 = vpack.c.bf16 %v1376_v63, %v1375_v61  ;;  %v2319_v2 = vpack.c.bf16 %v1408_v0, %v1407_v62 }
  0xda   : > { %v961_v4 = vpop.f32.mrf.mxu2  ;;  %v1041_v5 = vpop.f32.mrf.mxu3 }
  0xdb   : > { %2240 = vst [vmem:[%s3029_s27] sm:$0xff] %v2239_v1   ;;  %v962_v9 = vadd.f32 %v3017_v46, %v961_v4  ;;  %v1042_v10 = vadd.f32 %v3017_v46, %v1041_v5  ;;  %v804_v11 = vpop.f32.mrf.mxu0  ;;  %v884_v12 = vpop.f32.mrf.mxu1 }
  0xdc   : > { %2571 = vst [vmem:[%s3029_s27 + $0x80] sm:$0xff] %v2319_v2   ;;  %v805_v23 = vadd.f32 %v3017_v46, %v804_v11  ;;  %v885_v24 = vadd.f32 %v3017_v46, %v884_v12 }
  0xdd   : > { %vm1184_vm6 = vcmp.ge.f32.partialorder %v962_v9, 0.0  ;;  %v1312_v15 = vmul.f32 0.1, %v962_v9  ;;  %vm1216_vm7 = vcmp.ge.f32.partialorder %v1042_v10, 0.0  ;;  %v1344_v16 = vmul.f32 0.1, %v1042_v10 }
  0xde   : > { %843 = vmatmul.bf16.gmra.mxu0 %v2172_v6  ;;  %923 = vmatmul.bf16.gmra.mxu1 %v2188_v7  ;;  %v1249_v29 = vmul.f32 0.1, %v805_v23  ;;  %v1281_v30 = vmul.f32 0.1, %v885_v24  ;;  %vm1121_vm8 = vcmp.ge.f32.partialorder %v805_v23, 0.0  ;;  %vm1153_vm9 = vcmp.ge.f32.partialorder %v885_v24, 0.0 }
  0xdf   : > { %v1440_v19 = vsel %vm1184_vm6, %v962_v9, %v1312_v15  ;;  %v1472_v20 = vsel %vm1216_vm7, %v1042_v10, %v1344_v16  ;;  %1003 = vmatmul.bf16.gmra.mxu2 %v2204_v13  ;;  %1083 = vmatmul.bf16.gmra.mxu3 %v2220_v14 }
  0xe0   : > { %v2399_v21 = vpack.c.bf16 %v1440_v19, %v1439_v17  ;;  %v2479_v22 = vpack.c.bf16 %v1472_v20, %v1471_v18  ;;  %v1377_v37 = vsel %vm1121_vm8, %v805_v23, %v1249_v29  ;;  %v1409_v38 = vsel %vm1153_vm9, %v885_v24, %v1281_v30  ;;  %v2174_v23 = vld [vmem:[%s2968_s25 + $0x58] sm:$0xff] }
  0xe1   : > { %v2190_v24 = vld [vmem:[%s2968_s25 + $0xd8] sm:$0xff] }
  0xe2   : > { %2587 = vst [vmem:[%s3029_s27 + $0x100] sm:$0xff] %v2399_v21   ;;  %v964_v25 = vpop.f32.mrf.mxu2  ;;  %v1044_v26 = vpop.f32.mrf.mxu3  ;;  %v2206_v30 = vld [vmem:[%s2968_s25 + $0x158] sm:$0xff] }
  0xe3   : > { %2603 = vst [vmem:[%s3029_s27 + $0x180] sm:$0xff] %v2479_v22   ;;  %v806_v27 = vpop.f32.mrf.mxu0  ;;  %v886_v28 = vpop.f32.mrf.mxu1  ;;  %v965_v33 = vadd.f32 %v3017_v46, %v964_v25  ;;  %v1045_v36 = vadd.f32 %v3017_v46, %v1044_v26 }
  0xe4   : > { %v807_v31 = vadd.f32 %v3017_v46, %v806_v27  ;;  %v887_v32 = vadd.f32 %v3017_v46, %v886_v28 }
  0xe5   : > { %v1313_v43 = vmul.f32 0.1, %v965_v33  ;;  %vm1185_vm12 = vcmp.ge.f32.partialorder %v965_v33, 0.0  ;;  %v1345_v49 = vmul.f32 0.1, %v1045_v36  ;;  %vm1217_vm13 = vcmp.ge.f32.partialorder %v1045_v36, 0.0 }
  0xe6   : > { %vm1122_vm10 = vcmp.ge.f32.partialorder %v807_v31, 0.0  ;;  %v1250_v34 = vmul.f32 0.1, %v807_v31  ;;  %vm1154_vm11 = vcmp.ge.f32.partialorder %v887_v32, 0.0  ;;  %v1282_v35 = vmul.f32 0.1, %v887_v32 }
  0xe7   : > { %v1441_v58 = vsel %vm1185_vm12, %v965_v33, %v1313_v43  ;;  %v1473_v59 = vsel %vm1217_vm13, %v1045_v36, %v1345_v49 }
  0xe8   : > { %v1378_v39 = vsel %vm1122_vm10, %v807_v31, %v1250_v34  ;;  %v1410_v40 = vsel %vm1154_vm11, %v887_v32, %v1282_v35  ;;  %v2222_v31 = vld [vmem:[%s2968_s25 + $0x1d8] sm:$0xff] }
  0xe9   : > { %v2244_v41 = vpack.c.bf16 %v1378_v39, %v1377_v37  ;;  %v2324_v42 = vpack.c.bf16 %v1410_v40, %v1409_v38 }
  0xea   : > { %v966_v44 = vpop.f32.mrf.mxu2  ;;  %v1046_v45 = vpop.f32.mrf.mxu3 }
  0xeb   : > { %2556 = vst [vmem:[%s3029_s27 + $0x8] sm:$0xff] %v2244_v41   ;;  %v967_v50 = vadd.f32 %v3017_v46, %v966_v44  ;;  %v1047_v51 = vadd.f32 %v3017_v46, %v1046_v45  ;;  %v809_v52 = vpop.f32.mrf.mxu0  ;;  %v889_v53 = vpop.f32.mrf.mxu1 }
  0xec   : > { %2572 = vst [vmem:[%s3029_s27 + $0x88] sm:$0xff] %v2324_v42   ;;  %v810_v0 = vadd.f32 %v3017_v46, %v809_v52  ;;  %v890_v1 = vadd.f32 %v3017_v46, %v889_v53 }
  0xed   : > { %vm1186_vm14 = vcmp.ge.f32.partialorder %v967_v50, 0.0  ;;  %v1314_v56 = vmul.f32 0.1, %v967_v50  ;;  %vm1218_vm15 = vcmp.ge.f32.partialorder %v1047_v51, 0.0  ;;  %v1346_v57 = vmul.f32 0.1, %v1047_v51 }
  0xee   : > { %848 = vmatmul.bf16.gmra.mxu0 %v2173_v47  ;;  %928 = vmatmul.bf16.gmra.mxu1 %v2189_v48  ;;  %v1251_v6 = vmul.f32 0.1, %v810_v0  ;;  %v1283_v7 = vmul.f32 0.1, %v890_v1  ;;  %vm1123_vm0 = vcmp.ge.f32.partialorder %v810_v0, 0.0  ;;  %vm1155_vm1 = vcmp.ge.f32.partialorder %v890_v1, 0.0 }
  0xef   : > { %v1442_v60 = vsel %vm1186_vm14, %v967_v50, %v1314_v56  ;;  %v1474_v61 = vsel %vm1218_vm15, %v1047_v51, %v1346_v57  ;;  %1008 = vmatmul.bf16.gmra.mxu2 %v2205_v54  ;;  %1088 = vmatmul.bf16.gmra.mxu3 %v2221_v55 }
  0xf0   : > { %v2404_v62 = vpack.c.bf16 %v1442_v60, %v1441_v58  ;;  %v2484_v63 = vpack.c.bf16 %v1474_v61, %v1473_v59  ;;  %v1379_v14 = vsel %vm1123_vm0, %v810_v0, %v1251_v6  ;;  %v1411_v15 = vsel %vm1155_vm1, %v890_v1, %v1283_v7  ;;  %v2175_v0 = vld [vmem:[%s2968_s25 + $0x60] sm:$0xff] }
  0xf1   : > { %v2191_v1 = vld [vmem:[%s2968_s25 + $0xe0] sm:$0xff] }
  0xf2   : > { %2588 = vst [vmem:[%s3029_s27 + $0x108] sm:$0xff] %v2404_v62   ;;  %v969_v2 = vpop.f32.mrf.mxu2  ;;  %v1049_v3 = vpop.f32.mrf.mxu3  ;;  %v2207_v7 = vld [vmem:[%s2968_s25 + $0x160] sm:$0xff] }
  0xf3   : > { %2604 = vst [vmem:[%s3029_s27 + $0x188] sm:$0xff] %v2484_v63   ;;  %v811_v4 = vpop.f32.mrf.mxu0  ;;  %v891_v5 = vpop.f32.mrf.mxu1  ;;  %v970_v10 = vadd.f32 %v3017_v46, %v969_v2  ;;  %v1050_v13 = vadd.f32 %v3017_v46, %v1049_v3 }
  0xf4   : > { %v812_v8 = vadd.f32 %v3017_v46, %v811_v4  ;;  %v892_v9 = vadd.f32 %v3017_v46, %v891_v5 }
  0xf5   : > { %v1315_v20 = vmul.f32 0.1, %v970_v10  ;;  %vm1187_vm4 = vcmp.ge.f32.partialorder %v970_v10, 0.0  ;;  %v1347_v25 = vmul.f32 0.1, %v1050_v13  ;;  %vm1219_vm5 = vcmp.ge.f32.partialorder %v1050_v13, 0.0 }
  0xf6   : > { %vm1124_vm2 = vcmp.ge.f32.partialorder %v812_v8, 0.0  ;;  %v1252_v11 = vmul.f32 0.1, %v812_v8  ;;  %vm1156_vm3 = vcmp.ge.f32.partialorder %v892_v9, 0.0  ;;  %v1284_v12 = vmul.f32 0.1, %v892_v9 }
  0xf7   : > { %v1443_v34 = vsel %vm1187_vm4, %v970_v10, %v1315_v20  ;;  %v1475_v35 = vsel %vm1219_vm5, %v1050_v13, %v1347_v25 }
  0xf8   : > { %v1380_v16 = vsel %vm1124_vm2, %v812_v8, %v1252_v11  ;;  %v1412_v17 = vsel %vm1156_vm3, %v892_v9, %v1284_v12  ;;  %v2223_v8 = vld [vmem:[%s2968_s25 + $0x1e0] sm:$0xff] }
  0xf9   : > { %v2249_v18 = vpack.c.bf16 %v1380_v16, %v1379_v14  ;;  %v2329_v19 = vpack.c.bf16 %v1412_v17, %v1411_v15 }
  0xfa   : > { %v971_v21 = vpop.f32.mrf.mxu2  ;;  %v1051_v22 = vpop.f32.mrf.mxu3 }
  0xfb   : > { %2557 = vst [vmem:[%s3029_s27 + $0x10] sm:$0xff] %v2249_v18   ;;  %v972_v26 = vadd.f32 %v3017_v46, %v971_v21  ;;  %v1052_v27 = vadd.f32 %v3017_v46, %v1051_v22  ;;  %v814_v28 = vpop.f32.mrf.mxu0  ;;  %v894_v29 = vpop.f32.mrf.mxu1 }
  0xfc   : > { %2573 = vst [vmem:[%s3029_s27 + $0x90] sm:$0xff] %v2329_v19   ;;  %v815_v40 = vadd.f32 %v3017_v46, %v814_v28  ;;  %v895_v41 = vadd.f32 %v3017_v46, %v894_v29 }
  0xfd   : > { %vm1188_vm6 = vcmp.ge.f32.partialorder %v972_v26, 0.0  ;;  %v1316_v32 = vmul.f32 0.1, %v972_v26  ;;  %vm1220_vm7 = vcmp.ge.f32.partialorder %v1052_v27, 0.0  ;;  %v1348_v33 = vmul.f32 0.1, %v1052_v27 }
  0xfe   : > { %853 = vmatmul.bf16.gmra.mxu0 %v2174_v23  ;;  %933 = vmatmul.bf16.gmra.mxu1 %v2190_v24  ;;  %v1253_v47 = vmul.f32 0.1, %v815_v40  ;;  %v1285_v48 = vmul.f32 0.1, %v895_v41  ;;  %vm1125_vm8 = vcmp.ge.f32.partialorder %v815_v40, 0.0  ;;  %vm1157_vm9 = vcmp.ge.f32.partialorder %v895_v41, 0.0 }
  0xff   : > { %v1444_v36 = vsel %vm1188_vm6, %v972_v26, %v1316_v32  ;;  %v1476_v37 = vsel %vm1220_vm7, %v1052_v27, %v1348_v33  ;;  %1013 = vmatmul.bf16.gmra.mxu2 %v2206_v30  ;;  %1093 = vmatmul.bf16.gmra.mxu3 %v2222_v31 }
 0x100   : > { %v2409_v38 = vpack.c.bf16 %v1444_v36, %v1443_v34  ;;  %v2489_v39 = vpack.c.bf16 %v1476_v37, %v1475_v35  ;;  %v1381_v55 = vsel %vm1125_vm8, %v815_v40, %v1253_v47  ;;  %v1413_v56 = vsel %vm1157_vm9, %v895_v41, %v1285_v48  ;;  %v2176_v40 = vld [vmem:[%s2968_s25 + $0x68] sm:$0xff] }
 0x101   : > { %v2192_v41 = vld [vmem:[%s2968_s25 + $0xe8] sm:$0xff] }
 0x102   : > { %2589 = vst [vmem:[%s3029_s27 + $0x110] sm:$0xff] %v2409_v38   ;;  %v974_v42 = vpop.f32.mrf.mxu2  ;;  %v1054_v43 = vpop.f32.mrf.mxu3  ;;  %v2208_v48 = vld [vmem:[%s2968_s25 + $0x168] sm:$0xff] }
 0x103   : > { %2605 = vst [vmem:[%s3029_s27 + $0x190] sm:$0xff] %v2489_v39   ;;  %v816_v44 = vpop.f32.mrf.mxu0  ;;  %v896_v45 = vpop.f32.mrf.mxu1  ;;  %v975_v51 = vadd.f32 %v3017_v46, %v974_v42  ;;  %v1055_v54 = vadd.f32 %v3017_v46, %v1054_v43 }
 0x104   : > { %v817_v49 = vadd.f32 %v3017_v46, %v816_v44  ;;  %v897_v50 = vadd.f32 %v3017_v46, %v896_v45 }
 0x105   : > { %v1317_v61 = vmul.f32 0.1, %v975_v51  ;;  %vm1189_vm12 = vcmp.ge.f32.partialorder %v975_v51, 0.0  ;;  %v1349_v2 = vmul.f32 0.1, %v1055_v54  ;;  %vm1221_vm13 = vcmp.ge.f32.partialorder %v1055_v54, 0.0 }
 0x106   : > { %vm1126_vm10 = vcmp.ge.f32.partialorder %v817_v49, 0.0  ;;  %v1254_v52 = vmul.f32 0.1, %v817_v49  ;;  %vm1158_vm11 = vcmp.ge.f32.partialorder %v897_v50, 0.0  ;;  %v1286_v53 = vmul.f32 0.1, %v897_v50 }
 0x107   : > { %v1445_v11 = vsel %vm1189_vm12, %v975_v51, %v1317_v61  ;;  %v1477_v12 = vsel %vm1221_vm13, %v1055_v54, %v1349_v2 }
 0x108   : > { %v1382_v57 = vsel %vm1126_vm10, %v817_v49, %v1254_v52  ;;  %v1414_v58 = vsel %vm1158_vm11, %v897_v50, %v1286_v53  ;;  %v2224_v49 = vld [vmem:[%s2968_s25 + $0x1e8] sm:$0xff] }
 0x109   : > { %v2254_v59 = vpack.c.bf16 %v1382_v57, %v1381_v55  ;;  %v2334_v60 = vpack.c.bf16 %v1414_v58, %v1413_v56 }
 0x10a   : > { %v976_v62 = vpop.f32.mrf.mxu2  ;;  %v1056_v63 = vpop.f32.mrf.mxu3 }
 0x10b   : > { %2558 = vst [vmem:[%s3029_s27 + $0x18] sm:$0xff] %v2254_v59   ;;  %v977_v3 = vadd.f32 %v3017_v46, %v976_v62  ;;  %v1057_v4 = vadd.f32 %v3017_v46, %v1056_v63  ;;  %v819_v5 = vpop.f32.mrf.mxu0  ;;  %v899_v6 = vpop.f32.mrf.mxu1 }
 0x10c   : > { %2574 = vst [vmem:[%s3029_s27 + $0x98] sm:$0xff] %v2334_v60   ;;  %v820_v17 = vadd.f32 %v3017_v46, %v819_v5  ;;  %v900_v18 = vadd.f32 %v3017_v46, %v899_v6 }
 0x10d   : > { %vm1190_vm14 = vcmp.ge.f32.partialorder %v977_v3, 0.0  ;;  %v1318_v9 = vmul.f32 0.1, %v977_v3  ;;  %vm1222_vm15 = vcmp.ge.f32.partialorder %v1057_v4, 0.0  ;;  %v1350_v10 = vmul.f32 0.1, %v1057_v4 }
 0x10e   : > { %858 = vmatmul.bf16.gmra.mxu0 %v2175_v0  ;;  %938 = vmatmul.bf16.gmra.mxu1 %v2191_v1  ;;  %v1255_v23 = vmul.f32 0.1, %v820_v17  ;;  %v1287_v24 = vmul.f32 0.1, %v900_v18  ;;  %vm1127_vm0 = vcmp.ge.f32.partialorder %v820_v17, 0.0  ;;  %vm1159_vm1 = vcmp.ge.f32.partialorder %v900_v18, 0.0 }
 0x10f   : > { %v1446_v13 = vsel %vm1190_vm14, %v977_v3, %v1318_v9  ;;  %v1478_v14 = vsel %vm1222_vm15, %v1057_v4, %v1350_v10  ;;  %1018 = vmatmul.bf16.gmra.mxu2 %v2207_v7  ;;  %1098 = vmatmul.bf16.gmra.mxu3 %v2223_v8 }
 0x110   : > { %v2414_v15 = vpack.c.bf16 %v1446_v13, %v1445_v11  ;;  %v2494_v16 = vpack.c.bf16 %v1478_v14, %v1477_v12  ;;  %v1383_v31 = vsel %vm1127_vm0, %v820_v17, %v1255_v23  ;;  %v1415_v32 = vsel %vm1159_vm1, %v900_v18, %v1287_v24  ;;  %v2177_v17 = vld [vmem:[%s2968_s25 + $0x70] sm:$0xff] }
 0x111   : > { %v2193_v18 = vld [vmem:[%s2968_s25 + $0xf0] sm:$0xff] }
 0x112   : > { %2590 = vst [vmem:[%s3029_s27 + $0x118] sm:$0xff] %v2414_v15   ;;  %v979_v19 = vpop.f32.mrf.mxu2  ;;  %v1059_v20 = vpop.f32.mrf.mxu3  ;;  %v2209_v24 = vld [vmem:[%s2968_s25 + $0x170] sm:$0xff] }
 0x113   : > { %2606 = vst [vmem:[%s3029_s27 + $0x198] sm:$0xff] %v2494_v16   ;;  %v821_v21 = vpop.f32.mrf.mxu0  ;;  %v901_v22 = vpop.f32.mrf.mxu1  ;;  %v980_v27 = vadd.f32 %v3017_v46, %v979_v19  ;;  %v1060_v30 = vadd.f32 %v3017_v46, %v1059_v20 }
 0x114   : > { %v822_v25 = vadd.f32 %v3017_v46, %v821_v21  ;;  %v902_v26 = vadd.f32 %v3017_v46, %v901_v22 }
 0x115   : > { %v1319_v37 = vmul.f32 0.1, %v980_v27  ;;  %vm1191_vm4 = vcmp.ge.f32.partialorder %v980_v27, 0.0  ;;  %v1351_v42 = vmul.f32 0.1, %v1060_v30  ;;  %vm1223_vm5 = vcmp.ge.f32.partialorder %v1060_v30, 0.0 }
 0x116   : > { %vm1128_vm2 = vcmp.ge.f32.partialorder %v822_v25, 0.0  ;;  %v1256_v28 = vmul.f32 0.1, %v822_v25  ;;  %vm1160_vm3 = vcmp.ge.f32.partialorder %v902_v26, 0.0  ;;  %v1288_v29 = vmul.f32 0.1, %v902_v26 }
 0x117   : > { %v1447_v52 = vsel %vm1191_vm4, %v980_v27, %v1319_v37  ;;  %v1479_v53 = vsel %vm1223_vm5, %v1060_v30, %v1351_v42 }
 0x118   : > { %v1384_v33 = vsel %vm1128_vm2, %v822_v25, %v1256_v28  ;;  %v1416_v34 = vsel %vm1160_vm3, %v902_v26, %v1288_v29  ;;  %v2225_v25 = vld [vmem:[%s2968_s25 + $0x1f0] sm:$0xff] }
 0x119   : > { %v2259_v35 = vpack.c.bf16 %v1384_v33, %v1383_v31  ;;  %v2339_v36 = vpack.c.bf16 %v1416_v34, %v1415_v32 }
 0x11a   : > { %v981_v38 = vpop.f32.mrf.mxu2  ;;  %v1061_v39 = vpop.f32.mrf.mxu3 }
 0x11b   : > { %2559 = vst [vmem:[%s3029_s27 + $0x20] sm:$0xff] %v2259_v35   ;;  %v982_v43 = vadd.f32 %v3017_v46, %v981_v38  ;;  %v1062_v44 = vadd.f32 %v3017_v46, %v1061_v39  ;;  %v824_v45 = vpop.f32.mrf.mxu0  ;;  %v904_v47 = vpop.f32.mrf.mxu1 }
 0x11c   : > { %2575 = vst [vmem:[%s3029_s27 + $0xa0] sm:$0xff] %v2339_v36   ;;  %v825_v58 = vadd.f32 %v3017_v46, %v824_v45  ;;  %v905_v59 = vadd.f32 %v3017_v46, %v904_v47 }
 0x11d   : > { %vm1192_vm6 = vcmp.ge.f32.partialorder %v982_v43, 0.0  ;;  %v1320_v50 = vmul.f32 0.1, %v982_v43  ;;  %vm1224_vm7 = vcmp.ge.f32.partialorder %v1062_v44, 0.0  ;;  %v1352_v51 = vmul.f32 0.1, %v1062_v44 }
 0x11e   : > { %863 = vmatmul.bf16.gmra.mxu0 %v2176_v40  ;;  %943 = vmatmul.bf16.gmra.mxu1 %v2192_v41  ;;  %v1257_v0 = vmul.f32 0.1, %v825_v58  ;;  %v1289_v1 = vmul.f32 0.1, %v905_v59  ;;  %vm1129_vm8 = vcmp.ge.f32.partialorder %v825_v58, 0.0  ;;  %vm1161_vm9 = vcmp.ge.f32.partialorder %v905_v59, 0.0 }
 0x11f   : > { %v1448_v54 = vsel %vm1192_vm6, %v982_v43, %v1320_v50  ;;  %v1480_v55 = vsel %vm1224_vm7, %v1062_v44, %v1352_v51  ;;  %1023 = vmatmul.bf16.gmra.mxu2 %v2208_v48  ;;  %1103 = vmatmul.bf16.gmra.mxu3 %v2224_v49 }
 0x120   : > { %v2419_v56 = vpack.c.bf16 %v1448_v54, %v1447_v52  ;;  %v2499_v57 = vpack.c.bf16 %v1480_v55, %v1479_v53  ;;  %v1385_v8 = vsel %vm1129_vm8, %v825_v58, %v1257_v0  ;;  %v1417_v9 = vsel %vm1161_vm9, %v905_v59, %v1289_v1  ;;  %v2178_v58 = vld [vmem:[%s2968_s25 + $0x78] sm:$0xff] }
 0x121   : > { %v2194_v59 = vld [vmem:[%s2968_s25 + $0xf8] sm:$0xff] }
 0x122   : > { %2591 = vst [vmem:[%s3029_s27 + $0x120] sm:$0xff] %v2419_v56   ;;  %v984_v60 = vpop.f32.mrf.mxu2  ;;  %v1064_v61 = vpop.f32.mrf.mxu3  ;;  %v2210_v1 = vld [vmem:[%s2968_s25 + $0x178] sm:$0xff] }
 0x123   : > { %2607 = vst [vmem:[%s3029_s27 + $0x1a0] sm:$0xff] %v2499_v57   ;;  %v826_v62 = vpop.f32.mrf.mxu0  ;;  %v906_v63 = vpop.f32.mrf.mxu1  ;;  %v985_v4 = vadd.f32 %v3017_v46, %v984_v60  ;;  %v1065_v7 = vadd.f32 %v3017_v46, %v1064_v61 }
 0x124   : > { %v827_v2 = vadd.f32 %v3017_v46, %v826_v62  ;;  %v907_v3 = vadd.f32 %v3017_v46, %v906_v63 }
 0x125   : > { %v1321_v14 = vmul.f32 0.1, %v985_v4  ;;  %vm1193_vm12 = vcmp.ge.f32.partialorder %v985_v4, 0.0  ;;  %v1353_v19 = vmul.f32 0.1, %v1065_v7  ;;  %vm1225_vm13 = vcmp.ge.f32.partialorder %v1065_v7, 0.0 }
 0x126   : > { %vm1130_vm10 = vcmp.ge.f32.partialorder %v827_v2, 0.0  ;;  %v1258_v5 = vmul.f32 0.1, %v827_v2  ;;  %vm1162_vm11 = vcmp.ge.f32.partialorder %v907_v3, 0.0  ;;  %v1290_v6 = vmul.f32 0.1, %v907_v3 }
 0x127   : > { %v1449_v28 = vsel %vm1193_vm12, %v985_v4, %v1321_v14  ;;  %v1481_v29 = vsel %vm1225_vm13, %v1065_v7, %v1353_v19 }
 0x128   : > { %v1386_v10 = vsel %vm1130_vm10, %v827_v2, %v1258_v5  ;;  %v1418_v11 = vsel %vm1162_vm11, %v907_v3, %v1290_v6  ;;  %v2226_v2 = vld [vmem:[%s2968_s25 + $0x1f8] sm:$0xff] }
 0x129   : > { %v2264_v12 = vpack.c.bf16 %v1386_v10, %v1385_v8  ;;  %v2344_v13 = vpack.c.bf16 %v1418_v11, %v1417_v9 }
 0x12a   : > { %v986_v15 = vpop.f32.mrf.mxu2  ;;  %v1066_v16 = vpop.f32.mrf.mxu3 }
 0x12b   : > { %2560 = vst [vmem:[%s3029_s27 + $0x28] sm:$0xff] %v2264_v12   ;;  %v987_v20 = vadd.f32 %v3017_v46, %v986_v15  ;;  %v1067_v21 = vadd.f32 %v3017_v46, %v1066_v16  ;;  %v829_v22 = vpop.f32.mrf.mxu0  ;;  %v909_v23 = vpop.f32.mrf.mxu1 }
 0x12c   : > { %2576 = vst [vmem:[%s3029_s27 + $0xa8] sm:$0xff] %v2344_v13   ;;  %v830_v34 = vadd.f32 %v3017_v46, %v829_v22  ;;  %v910_v35 = vadd.f32 %v3017_v46, %v909_v23 }
 0x12d   : > { %vm1194_vm14 = vcmp.ge.f32.partialorder %v987_v20, 0.0  ;;  %v1322_v26 = vmul.f32 0.1, %v987_v20  ;;  %vm1226_vm15 = vcmp.ge.f32.partialorder %v1067_v21, 0.0  ;;  %v1354_v27 = vmul.f32 0.1, %v1067_v21 }
 0x12e   : > { %868 = vmatmul.bf16.gmra.mxu0 %v2177_v17  ;;  %948 = vmatmul.bf16.gmra.mxu1 %v2193_v18  ;;  %v1259_v40 = vmul.f32 0.1, %v830_v34  ;;  %v1291_v41 = vmul.f32 0.1, %v910_v35  ;;  %vm1131_vm0 = vcmp.ge.f32.partialorder %v830_v34, 0.0  ;;  %vm1163_vm1 = vcmp.ge.f32.partialorder %v910_v35, 0.0 }
 0x12f   : > { %v1450_v30 = vsel %vm1194_vm14, %v987_v20, %v1322_v26  ;;  %v1482_v31 = vsel %vm1226_vm15, %v1067_v21, %v1354_v27  ;;  %1028 = vmatmul.bf16.gmra.mxu2 %v2209_v24  ;;  %1108 = vmatmul.bf16.gmra.mxu3 %v2225_v25 }
 0x130   : > { %v2424_v32 = vpack.c.bf16 %v1450_v30, %v1449_v28  ;;  %v2504_v33 = vpack.c.bf16 %v1482_v31, %v1481_v29  ;;  %v1387_v49 = vsel %vm1131_vm0, %v830_v34, %v1259_v40  ;;  %v1419_v50 = vsel %vm1163_vm1, %v910_v35, %v1291_v41 }
 0x132   : > { %2592 = vst [vmem:[%s3029_s27 + $0x128] sm:$0xff] %v2424_v32   ;;  %v989_v36 = vpop.f32.mrf.mxu2  ;;  %v1069_v37 = vpop.f32.mrf.mxu3 }
 0x133   : > { %2608 = vst [vmem:[%s3029_s27 + $0x1a8] sm:$0xff] %v2504_v33   ;;  %v831_v38 = vpop.f32.mrf.mxu0  ;;  %v911_v39 = vpop.f32.mrf.mxu1  ;;  %v990_v44 = vadd.f32 %v3017_v46, %v989_v36  ;;  %v1070_v48 = vadd.f32 %v3017_v46, %v1069_v37 }
 0x134   : > { %v832_v42 = vadd.f32 %v3017_v46, %v831_v38  ;;  %v912_v43 = vadd.f32 %v3017_v46, %v911_v39 }
 0x135   : > { %v1323_v55 = vmul.f32 0.1, %v990_v44  ;;  %vm1195_vm4 = vcmp.ge.f32.partialorder %v990_v44, 0.0  ;;  %v1355_v60 = vmul.f32 0.1, %v1070_v48  ;;  %vm1227_vm5 = vcmp.ge.f32.partialorder %v1070_v48, 0.0 }
 0x136   : > { %vm1132_vm2 = vcmp.ge.f32.partialorder %v832_v42, 0.0  ;;  %v1260_v45 = vmul.f32 0.1, %v832_v42  ;;  %vm1164_vm3 = vcmp.ge.f32.partialorder %v912_v43, 0.0  ;;  %v1292_v47 = vmul.f32 0.1, %v912_v43 }
 0x137   : > { %v1451_v5 = vsel %vm1195_vm4, %v990_v44, %v1323_v55  ;;  %v1483_v6 = vsel %vm1227_vm5, %v1070_v48, %v1355_v60 }
 0x138   : > { %v1388_v51 = vsel %vm1132_vm2, %v832_v42, %v1260_v45  ;;  %v1420_v52 = vsel %vm1164_vm3, %v912_v43, %v1292_v47 }
 0x139   : > { %v2269_v53 = vpack.c.bf16 %v1388_v51, %v1387_v49  ;;  %v2349_v54 = vpack.c.bf16 %v1420_v52, %v1419_v50 }
 0x13a   : > { %v991_v56 = vpop.f32.mrf.mxu2  ;;  %v1071_v57 = vpop.f32.mrf.mxu3 }
 0x13b   : > { %2561 = vst [vmem:[%s3029_s27 + $0x30] sm:$0xff] %v2269_v53   ;;  %v992_v61 = vadd.f32 %v3017_v46, %v991_v56  ;;  %v1072_v62 = vadd.f32 %v3017_v46, %v1071_v57  ;;  %v834_v63 = vpop.f32.mrf.mxu0  ;;  %v914_v0 = vpop.f32.mrf.mxu1 }
 0x13c   : > { %2577 = vst [vmem:[%s3029_s27 + $0xb0] sm:$0xff] %v2349_v54   ;;  %v835_v11 = vadd.f32 %v3017_v46, %v834_v63  ;;  %v915_v12 = vadd.f32 %v3017_v46, %v914_v0 }
 0x13d   : > { %vm1196_vm6 = vcmp.ge.f32.partialorder %v992_v61, 0.0  ;;  %v1324_v3 = vmul.f32 0.1, %v992_v61  ;;  %vm1228_vm7 = vcmp.ge.f32.partialorder %v1072_v62, 0.0  ;;  %v1356_v4 = vmul.f32 0.1, %v1072_v62 }
 0x13e   : > { %873 = vmatmul.bf16.gmra.mxu0 %v2178_v58  ;;  %953 = vmatmul.bf16.gmra.mxu1 %v2194_v59  ;;  %v1261_v17 = vmul.f32 0.1, %v835_v11  ;;  %v1293_v18 = vmul.f32 0.1, %v915_v12  ;;  %vm1133_vm8 = vcmp.ge.f32.partialorder %v835_v11, 0.0  ;;  %vm1165_vm9 = vcmp.ge.f32.partialorder %v915_v12, 0.0 }
 0x13f   : > { %v1452_v7 = vsel %vm1196_vm6, %v992_v61, %v1324_v3  ;;  %v1484_v8 = vsel %vm1228_vm7, %v1072_v62, %v1356_v4  ;;  %1033 = vmatmul.bf16.gmra.mxu2 %v2210_v1  ;;  %1113 = vmatmul.bf16.gmra.mxu3 %v2226_v2 }
 0x140   : > { %v2429_v9 = vpack.c.bf16 %v1452_v7, %v1451_v5  ;;  %v2509_v10 = vpack.c.bf16 %v1484_v8, %v1483_v6  ;;  %v1389_v25 = vsel %vm1133_vm8, %v835_v11, %v1261_v17  ;;  %v1421_v26 = vsel %vm1165_vm9, %v915_v12, %v1293_v18 }
 0x142   : > { %2593 = vst [vmem:[%s3029_s27 + $0x130] sm:$0xff] %v2429_v9   ;;  %v994_v13 = vpop.f32.mrf.mxu2  ;;  %v1074_v14 = vpop.f32.mrf.mxu3 }
 0x143   : > { %2609 = vst [vmem:[%s3029_s27 + $0x1b0] sm:$0xff] %v2509_v10   ;;  %v836_v15 = vpop.f32.mrf.mxu0  ;;  %v916_v16 = vpop.f32.mrf.mxu1  ;;  %v995_v23 = vadd.f32 %v3017_v46, %v994_v13  ;;  %v1075_v24 = vadd.f32 %v3017_v46, %v1074_v14 }
 0x144   : > { %v837_v19 = vadd.f32 %v3017_v46, %v836_v15  ;;  %v917_v20 = vadd.f32 %v3017_v46, %v916_v16 }
 0x145   : > { %v1325_v33 = vmul.f32 0.1, %v995_v23  ;;  %v1357_v34 = vmul.f32 0.1, %v1075_v24  ;;  %vm1197_vm12 = vcmp.ge.f32.partialorder %v995_v23, 0.0  ;;  %vm1229_vm13 = vcmp.ge.f32.partialorder %v1075_v24, 0.0 }
 0x146   : > { %vm1134_vm10 = vcmp.ge.f32.partialorder %v837_v19, 0.0  ;;  %v1262_v21 = vmul.f32 0.1, %v837_v19  ;;  %vm1166_vm11 = vcmp.ge.f32.partialorder %v917_v20, 0.0  ;;  %v1294_v22 = vmul.f32 0.1, %v917_v20 }
 0x147   : > { %v1453_v41 = vsel %vm1197_vm12, %v995_v23, %v1325_v33  ;;  %v1485_v42 = vsel %vm1229_vm13, %v1075_v24, %v1357_v34 }
 0x148   : > { %v1390_v27 = vsel %vm1134_vm10, %v837_v19, %v1262_v21  ;;  %v1422_v28 = vsel %vm1166_vm11, %v917_v20, %v1294_v22 }
 0x149   : > { %v2274_v29 = vpack.c.bf16 %v1390_v27, %v1389_v25  ;;  %v2354_v30 = vpack.c.bf16 %v1422_v28, %v1421_v26 }
 0x14a   : > { %v996_v31 = vpop.f32.mrf.mxu2  ;;  %v1076_v32 = vpop.f32.mrf.mxu3 }
 0x14b   : > { %2562 = vst [vmem:[%s3029_s27 + $0x38] sm:$0xff] %v2274_v29   ;;  %v997_v35 = vadd.f32 %v3017_v46, %v996_v31  ;;  %v1077_v36 = vadd.f32 %v3017_v46, %v1076_v32  ;;  %v839_v37 = vpop.f32.mrf.mxu0  ;;  %v919_v38 = vpop.f32.mrf.mxu1 }
 0x14c   : > { %2578 = vst [vmem:[%s3029_s27 + $0xb8] sm:$0xff] %v2354_v30   ;;  %v840_v48 = vadd.f32 %v3017_v46, %v839_v37  ;;  %v920_v49 = vadd.f32 %v3017_v46, %v919_v38 }
 0x14d   : > { %vm1198_vm14 = vcmp.ge.f32.partialorder %v997_v35, 0.0  ;;  %v1326_v39 = vmul.f32 0.1, %v997_v35  ;;  %vm1230_vm15 = vcmp.ge.f32.partialorder %v1077_v36, 0.0  ;;  %v1358_v40 = vmul.f32 0.1, %v1077_v36 }
 0x14e   : > { %v1263_v54 = vmul.f32 0.1, %v840_v48  ;;  %v1295_v55 = vmul.f32 0.1, %v920_v49  ;;  %vm1135_vm0 = vcmp.ge.f32.partialorder %v840_v48, 0.0  ;;  %vm1167_vm1 = vcmp.ge.f32.partialorder %v920_v49, 0.0 }
 0x14f   : > { %v1454_v43 = vsel %vm1198_vm14, %v997_v35, %v1326_v39  ;;  %v1486_v44 = vsel %vm1230_vm15, %v1077_v36, %v1358_v40 }
 0x150   : > { %v2434_v45 = vpack.c.bf16 %v1454_v43, %v1453_v41  ;;  %v2514_v47 = vpack.c.bf16 %v1486_v44, %v1485_v42  ;;  %v1391_v62 = vsel %vm1135_vm0, %v840_v48, %v1263_v54  ;;  %v1423_v63 = vsel %vm1167_vm1, %v920_v49, %v1295_v55  ;;  %v3170_v44 = vld [vmem:[%s3285_s2] ss:$0 sm:$0xff] }
 0x152   : > { %2594 = vst [vmem:[%s3029_s27 + $0x138] sm:$0xff] %v2434_v45   ;;  %v999_v50 = vpop.f32.mrf.mxu2  ;;  %v1079_v51 = vpop.f32.mrf.mxu3 }
 0x153   : > { %2610 = vst [vmem:[%s3029_s27 + $0x1b8] sm:$0xff] %v2514_v47   ;;  %v841_v52 = vpop.f32.mrf.mxu0  ;;  %v921_v53 = vpop.f32.mrf.mxu1  ;;  %v1000_v60 = vadd.f32 %v3017_v46, %v999_v50  ;;  %v1080_v61 = vadd.f32 %v3017_v46, %v1079_v51 }
 0x154   : > { %v842_v56 = vadd.f32 %v3017_v46, %v841_v52  ;;  %v922_v57 = vadd.f32 %v3017_v46, %v921_v53 }
 0x155   : > { %v1327_v6 = vmul.f32 0.1, %v1000_v60  ;;  %v1359_v7 = vmul.f32 0.1, %v1080_v61  ;;  %vm1199_vm4 = vcmp.ge.f32.partialorder %v1000_v60, 0.0  ;;  %vm1231_vm5 = vcmp.ge.f32.partialorder %v1080_v61, 0.0 }
 0x156   : > { %vm1136_vm2 = vcmp.ge.f32.partialorder %v842_v56, 0.0  ;;  %v1264_v58 = vmul.f32 0.1, %v842_v56  ;;  %vm1168_vm3 = vcmp.ge.f32.partialorder %v922_v57, 0.0  ;;  %v1296_v59 = vmul.f32 0.1, %v922_v57 }
 0x157   : > { %v1455_v14 = vsel %vm1199_vm4, %v1000_v60, %v1327_v6  ;;  %v1487_v15 = vsel %vm1231_vm5, %v1080_v61, %v1359_v7 }
 0x158   : > { %v1392_v0 = vsel %vm1136_vm2, %v842_v56, %v1264_v58  ;;  %v1424_v1 = vsel %vm1168_vm3, %v922_v57, %v1296_v59 }
 0x159   : > { %v2279_v2 = vpack.c.bf16 %v1392_v0, %v1391_v62  ;;  %v2359_v3 = vpack.c.bf16 %v1424_v1, %v1423_v63 }
 0x15a   : > { %v1001_v4 = vpop.f32.mrf.mxu2  ;;  %v1081_v5 = vpop.f32.mrf.mxu3 }
 0x15b   : > { %2563 = vst [vmem:[%s3029_s27 + $0x40] sm:$0xff] %v2279_v2   ;;  %v1002_v8 = vadd.f32 %v3017_v46, %v1001_v4  ;;  %v1082_v9 = vadd.f32 %v3017_v46, %v1081_v5  ;;  %v844_v10 = vpop.f32.mrf.mxu0  ;;  %v924_v11 = vpop.f32.mrf.mxu1 }
 0x15c   : > { %2579 = vst [vmem:[%s3029_s27 + $0xc0] sm:$0xff] %v2359_v3   ;;  %v845_v20 = vadd.f32 %v3017_v46, %v844_v10  ;;  %v925_v21 = vadd.f32 %v3017_v46, %v924_v11 }
 0x15d   : > { %vm1200_vm6 = vcmp.ge.f32.partialorder %v1002_v8, 0.0  ;;  %v1328_v12 = vmul.f32 0.1, %v1002_v8  ;;  %vm1232_vm7 = vcmp.ge.f32.partialorder %v1082_v9, 0.0  ;;  %v1360_v13 = vmul.f32 0.1, %v1082_v9 }
 0x15e   : > { %v1265_v26 = vmul.f32 0.1, %v845_v20  ;;  %v1297_v27 = vmul.f32 0.1, %v925_v21  ;;  %vm1137_vm8 = vcmp.ge.f32.partialorder %v845_v20, 0.0  ;;  %vm1169_vm9 = vcmp.ge.f32.partialorder %v925_v21, 0.0 }
 0x15f   : > { %v1456_v16 = vsel %vm1200_vm6, %v1002_v8, %v1328_v12  ;;  %v1488_v17 = vsel %vm1232_vm7, %v1082_v9, %v1360_v13 }
 0x160   : > { %v2439_v18 = vpack.c.bf16 %v1456_v16, %v1455_v14  ;;  %v2519_v19 = vpack.c.bf16 %v1488_v17, %v1487_v15  ;;  %v1393_v34 = vsel %vm1137_vm8, %v845_v20, %v1265_v26  ;;  %v1425_v35 = vsel %vm1169_vm9, %v925_v21, %v1297_v27 }
 0x162   : > { %2595 = vst [vmem:[%s3029_s27 + $0x140] sm:$0xff] %v2439_v18   ;;  %v1004_v22 = vpop.f32.mrf.mxu2  ;;  %v1084_v23 = vpop.f32.mrf.mxu3 }
 0x163   : > { %2611 = vst [vmem:[%s3029_s27 + $0x1c0] sm:$0xff] %v2519_v19   ;;  %v846_v24 = vpop.f32.mrf.mxu0  ;;  %v926_v25 = vpop.f32.mrf.mxu1  ;;  %v1005_v32 = vadd.f32 %v3017_v46, %v1004_v22  ;;  %v1085_v33 = vadd.f32 %v3017_v46, %v1084_v23 }
 0x164   : > { %v847_v28 = vadd.f32 %v3017_v46, %v846_v24  ;;  %v927_v29 = vadd.f32 %v3017_v46, %v926_v25 }
 0x165   : > { %v1329_v42 = vmul.f32 0.1, %v1005_v32  ;;  %v1361_v43 = vmul.f32 0.1, %v1085_v33  ;;  %vm1201_vm12 = vcmp.ge.f32.partialorder %v1005_v32, 0.0  ;;  %vm1233_vm13 = vcmp.ge.f32.partialorder %v1085_v33, 0.0 }
 0x166   : > { %vm1138_vm10 = vcmp.ge.f32.partialorder %v847_v28, 0.0  ;;  %v1266_v30 = vmul.f32 0.1, %v847_v28  ;;  %vm1170_vm11 = vcmp.ge.f32.partialorder %v927_v29, 0.0  ;;  %v1298_v31 = vmul.f32 0.1, %v927_v29 }
 0x167   : > { %v1457_v51 = vsel %vm1201_vm12, %v1005_v32, %v1329_v42  ;;  %v1489_v52 = vsel %vm1233_vm13, %v1085_v33, %v1361_v43 }
 0x168   : > { %v1394_v36 = vsel %vm1138_vm10, %v847_v28, %v1266_v30  ;;  %v1426_v37 = vsel %vm1170_vm11, %v927_v29, %v1298_v31 }
 0x169   : > { %v2284_v38 = vpack.c.bf16 %v1394_v36, %v1393_v34  ;;  %v2364_v39 = vpack.c.bf16 %v1426_v37, %v1425_v35 }
 0x16a   : > { %v1006_v40 = vpop.f32.mrf.mxu2  ;;  %v1086_v41 = vpop.f32.mrf.mxu3 }
 0x16b   : > { %2564 = vst [vmem:[%s3029_s27 + $0x48] sm:$0xff] %v2284_v38   ;;  %v1007_v45 = vadd.f32 %v3170_v44, %v1006_v40  ;;  %v1087_v46 = vadd.f32 %v3170_v44, %v1086_v41  ;;  %v849_v47 = vpop.f32.mrf.mxu0  ;;  %v929_v48 = vpop.f32.mrf.mxu1 }
 0x16c   : > { %2580 = vst [vmem:[%s3029_s27 + $0xc8] sm:$0xff] %v2364_v39   ;;  %v850_v57 = vadd.f32 %v3170_v44, %v849_v47  ;;  %v930_v58 = vadd.f32 %v3170_v44, %v929_v48 }
 0x16d   : > { %vm1202_vm14 = vcmp.ge.f32.partialorder %v1007_v45, 0.0  ;;  %v1330_v49 = vmul.f32 0.1, %v1007_v45  ;;  %vm1234_vm15 = vcmp.ge.f32.partialorder %v1087_v46, 0.0  ;;  %v1362_v50 = vmul.f32 0.1, %v1087_v46 }
 0x16e   : > { %v1267_v63 = vmul.f32 0.1, %v850_v57  ;;  %v1299_v0 = vmul.f32 0.1, %v930_v58  ;;  %vm1139_vm0 = vcmp.ge.f32.partialorder %v850_v57, 0.0  ;;  %vm1171_vm1 = vcmp.ge.f32.partialorder %v930_v58, 0.0 }
 0x16f   : > { %v1458_v53 = vsel %vm1202_vm14, %v1007_v45, %v1330_v49  ;;  %v1490_v54 = vsel %vm1234_vm15, %v1087_v46, %v1362_v50 }
 0x170   : > { %v2444_v55 = vpack.c.bf16 %v1458_v53, %v1457_v51  ;;  %v2524_v56 = vpack.c.bf16 %v1490_v54, %v1489_v52  ;;  %v1395_v7 = vsel %vm1139_vm0, %v850_v57, %v1267_v63  ;;  %v1427_v8 = vsel %vm1171_vm1, %v930_v58, %v1299_v0 }
 0x172   : > { %2596 = vst [vmem:[%s3029_s27 + $0x148] sm:$0xff] %v2444_v55   ;;  %v1009_v59 = vpop.f32.mrf.mxu2  ;;  %v1089_v60 = vpop.f32.mrf.mxu3 }
 0x173   : > { %2612 = vst [vmem:[%s3029_s27 + $0x1c8] sm:$0xff] %v2524_v56   ;;  %v851_v61 = vpop.f32.mrf.mxu0  ;;  %v931_v62 = vpop.f32.mrf.mxu1  ;;  %v1010_v5 = vadd.f32 %v3170_v44, %v1009_v59  ;;  %v1090_v6 = vadd.f32 %v3170_v44, %v1089_v60 }
 0x174   : > { %v852_v1 = vadd.f32 %v3170_v44, %v851_v61  ;;  %v932_v2 = vadd.f32 %v3170_v44, %v931_v62 }
 0x175   : > { %v1331_v15 = vmul.f32 0.1, %v1010_v5  ;;  %v1363_v16 = vmul.f32 0.1, %v1090_v6  ;;  %vm1203_vm4 = vcmp.ge.f32.partialorder %v1010_v5, 0.0  ;;  %vm1235_vm5 = vcmp.ge.f32.partialorder %v1090_v6, 0.0 }
 0x176   : > { %vm1140_vm2 = vcmp.ge.f32.partialorder %v852_v1, 0.0  ;;  %v1268_v3 = vmul.f32 0.1, %v852_v1  ;;  %vm1172_vm3 = vcmp.ge.f32.partialorder %v932_v2, 0.0  ;;  %v1300_v4 = vmul.f32 0.1, %v932_v2 }
 0x177   : > { %v1459_v23 = vsel %vm1203_vm4, %v1010_v5, %v1331_v15  ;;  %v1491_v24 = vsel %vm1235_vm5, %v1090_v6, %v1363_v16 }
 0x178   : > { %v1396_v9 = vsel %vm1140_vm2, %v852_v1, %v1268_v3  ;;  %v1428_v10 = vsel %vm1172_vm3, %v932_v2, %v1300_v4 }
 0x179   : > { %v2289_v11 = vpack.c.bf16 %v1396_v9, %v1395_v7  ;;  %v2369_v12 = vpack.c.bf16 %v1428_v10, %v1427_v8 }
 0x17a   : > { %v1011_v13 = vpop.f32.mrf.mxu2  ;;  %v1091_v14 = vpop.f32.mrf.mxu3 }
 0x17b   : > { %2565 = vst [vmem:[%s3029_s27 + $0x50] sm:$0xff] %v2289_v11   ;;  %v1012_v17 = vadd.f32 %v3170_v44, %v1011_v13  ;;  %v1092_v18 = vadd.f32 %v3170_v44, %v1091_v14  ;;  %v854_v19 = vpop.f32.mrf.mxu0  ;;  %v934_v20 = vpop.f32.mrf.mxu1 }
 0x17c   : > { %2581 = vst [vmem:[%s3029_s27 + $0xd0] sm:$0xff] %v2369_v12   ;;  %v855_v29 = vadd.f32 %v3170_v44, %v854_v19  ;;  %v935_v30 = vadd.f32 %v3170_v44, %v934_v20 }
 0x17d   : > { %vm1204_vm6 = vcmp.ge.f32.partialorder %v1012_v17, 0.0  ;;  %v1332_v21 = vmul.f32 0.1, %v1012_v17  ;;  %vm1236_vm7 = vcmp.ge.f32.partialorder %v1092_v18, 0.0  ;;  %v1364_v22 = vmul.f32 0.1, %v1092_v18 }
 0x17e   : > { %v1269_v35 = vmul.f32 0.1, %v855_v29  ;;  %v1301_v36 = vmul.f32 0.1, %v935_v30  ;;  %vm1141_vm8 = vcmp.ge.f32.partialorder %v855_v29, 0.0  ;;  %vm1173_vm9 = vcmp.ge.f32.partialorder %v935_v30, 0.0 }
 0x17f   : > { %v1460_v25 = vsel %vm1204_vm6, %v1012_v17, %v1332_v21  ;;  %v1492_v26 = vsel %vm1236_vm7, %v1092_v18, %v1364_v22 }
 0x180   : > { %v2449_v27 = vpack.c.bf16 %v1460_v25, %v1459_v23  ;;  %v2529_v28 = vpack.c.bf16 %v1492_v26, %v1491_v24  ;;  %v1397_v43 = vsel %vm1141_vm8, %v855_v29, %v1269_v35  ;;  %v1429_v45 = vsel %vm1173_vm9, %v935_v30, %v1301_v36 }
 0x182   : > { %2597 = vst [vmem:[%s3029_s27 + $0x150] sm:$0xff] %v2449_v27   ;;  %v1014_v31 = vpop.f32.mrf.mxu2  ;;  %v1094_v32 = vpop.f32.mrf.mxu3 }
 0x183   : > { %2613 = vst [vmem:[%s3029_s27 + $0x1d0] sm:$0xff] %v2529_v28   ;;  %v856_v33 = vpop.f32.mrf.mxu0  ;;  %v936_v34 = vpop.f32.mrf.mxu1  ;;  %v1015_v41 = vadd.f32 %v3170_v44, %v1014_v31  ;;  %v1095_v42 = vadd.f32 %v3170_v44, %v1094_v32 }
 0x184   : > { %v857_v37 = vadd.f32 %v3170_v44, %v856_v33  ;;  %v937_v38 = vadd.f32 %v3170_v44, %v936_v34 }
 0x185   : > { %v1333_v52 = vmul.f32 0.1, %v1015_v41  ;;  %v1365_v53 = vmul.f32 0.1, %v1095_v42  ;;  %vm1205_vm12 = vcmp.ge.f32.partialorder %v1015_v41, 0.0  ;;  %vm1237_vm13 = vcmp.ge.f32.partialorder %v1095_v42, 0.0 }
 0x186   : > { %vm1142_vm10 = vcmp.ge.f32.partialorder %v857_v37, 0.0  ;;  %v1270_v39 = vmul.f32 0.1, %v857_v37  ;;  %vm1174_vm11 = vcmp.ge.f32.partialorder %v937_v38, 0.0  ;;  %v1302_v40 = vmul.f32 0.1, %v937_v38 }
 0x187   : > { %v1461_v60 = vsel %vm1205_vm12, %v1015_v41, %v1333_v52  ;;  %v1493_v61 = vsel %vm1237_vm13, %v1095_v42, %v1365_v53 }
 0x188   : > { %v1398_v46 = vsel %vm1142_vm10, %v857_v37, %v1270_v39  ;;  %v1430_v47 = vsel %vm1174_vm11, %v937_v38, %v1302_v40 }
 0x189   : > { %v2294_v48 = vpack.c.bf16 %v1398_v46, %v1397_v43  ;;  %v2374_v49 = vpack.c.bf16 %v1430_v47, %v1429_v45 }
 0x18a   : > { %v1016_v50 = vpop.f32.mrf.mxu2  ;;  %v1096_v51 = vpop.f32.mrf.mxu3 }
 0x18b   : > { %2566 = vst [vmem:[%s3029_s27 + $0x58] sm:$0xff] %v2294_v48   ;;  %v1017_v54 = vadd.f32 %v3170_v44, %v1016_v50  ;;  %v1097_v55 = vadd.f32 %v3170_v44, %v1096_v51  ;;  %v859_v56 = vpop.f32.mrf.mxu0  ;;  %v939_v57 = vpop.f32.mrf.mxu1 }
 0x18c   : > { %2582 = vst [vmem:[%s3029_s27 + $0xd8] sm:$0xff] %v2374_v49   ;;  %v860_v2 = vadd.f32 %v3170_v44, %v859_v56  ;;  %v940_v3 = vadd.f32 %v3170_v44, %v939_v57 }
 0x18d   : > { %vm1206_vm14 = vcmp.ge.f32.partialorder %v1017_v54, 0.0  ;;  %v1334_v58 = vmul.f32 0.1, %v1017_v54  ;;  %vm1238_vm15 = vcmp.ge.f32.partialorder %v1097_v55, 0.0  ;;  %v1366_v59 = vmul.f32 0.1, %v1097_v55 }
 0x18e   : > { %v1271_v8 = vmul.f32 0.1, %v860_v2  ;;  %v1303_v9 = vmul.f32 0.1, %v940_v3  ;;  %vm1143_vm0 = vcmp.ge.f32.partialorder %v860_v2, 0.0  ;;  %vm1175_vm1 = vcmp.ge.f32.partialorder %v940_v3, 0.0 }
 0x18f   : > { %v1462_v62 = vsel %vm1206_vm14, %v1017_v54, %v1334_v58  ;;  %v1494_v63 = vsel %vm1238_vm15, %v1097_v55, %v1366_v59 }
 0x190   : > { %v2454_v0 = vpack.c.bf16 %v1462_v62, %v1461_v60  ;;  %v2534_v1 = vpack.c.bf16 %v1494_v63, %v1493_v61  ;;  %v1399_v16 = vsel %vm1143_vm0, %v860_v2, %v1271_v8  ;;  %v1431_v17 = vsel %vm1175_vm1, %v940_v3, %v1303_v9 }
 0x192   : > { %2598 = vst [vmem:[%s3029_s27 + $0x158] sm:$0xff] %v2454_v0   ;;  %v1019_v4 = vpop.f32.mrf.mxu2  ;;  %v1099_v5 = vpop.f32.mrf.mxu3 }
 0x193   : > { %2614 = vst [vmem:[%s3029_s27 + $0x1d8] sm:$0xff] %v2534_v1   ;;  %v861_v6 = vpop.f32.mrf.mxu0  ;;  %v941_v7 = vpop.f32.mrf.mxu1  ;;  %v1020_v14 = vadd.f32 %v3170_v44, %v1019_v4  ;;  %v1100_v15 = vadd.f32 %v3170_v44, %v1099_v5 }
 0x194   : > { %v862_v10 = vadd.f32 %v3170_v44, %v861_v6  ;;  %v942_v11 = vadd.f32 %v3170_v44, %v941_v7 }
 0x195   : > { %v1335_v24 = vmul.f32 0.1, %v1020_v14  ;;  %v1367_v25 = vmul.f32 0.1, %v1100_v15  ;;  %vm1207_vm4 = vcmp.ge.f32.partialorder %v1020_v14, 0.0  ;;  %vm1239_vm5 = vcmp.ge.f32.partialorder %v1100_v15, 0.0 }
 0x196   : > { %vm1144_vm2 = vcmp.ge.f32.partialorder %v862_v10, 0.0  ;;  %v1272_v12 = vmul.f32 0.1, %v862_v10  ;;  %vm1176_vm3 = vcmp.ge.f32.partialorder %v942_v11, 0.0  ;;  %v1304_v13 = vmul.f32 0.1, %v942_v11 }
 0x197   : > { %v1463_v32 = vsel %vm1207_vm4, %v1020_v14, %v1335_v24  ;;  %v1495_v33 = vsel %vm1239_vm5, %v1100_v15, %v1367_v25 }
 0x198   : > { %v1400_v18 = vsel %vm1144_vm2, %v862_v10, %v1272_v12  ;;  %v1432_v19 = vsel %vm1176_vm3, %v942_v11, %v1304_v13 }
 0x199   : > { %v2299_v20 = vpack.c.bf16 %v1400_v18, %v1399_v16  ;;  %v2379_v21 = vpack.c.bf16 %v1432_v19, %v1431_v17 }
 0x19a   : > { %v1021_v22 = vpop.f32.mrf.mxu2  ;;  %v1101_v23 = vpop.f32.mrf.mxu3 }
 0x19b   : > { %2567 = vst [vmem:[%s3029_s27 + $0x60] sm:$0xff] %v2299_v20   ;;  %v1022_v26 = vadd.f32 %v3170_v44, %v1021_v22  ;;  %v1102_v27 = vadd.f32 %v3170_v44, %v1101_v23  ;;  %v864_v28 = vpop.f32.mrf.mxu0  ;;  %v944_v29 = vpop.f32.mrf.mxu1 }
 0x19c   : > { %2583 = vst [vmem:[%s3029_s27 + $0xe0] sm:$0xff] %v2379_v21   ;;  %v865_v38 = vadd.f32 %v3170_v44, %v864_v28  ;;  %v945_v39 = vadd.f32 %v3170_v44, %v944_v29 }
 0x19d   : > { %vm1208_vm6 = vcmp.ge.f32.partialorder %v1022_v26, 0.0  ;;  %v1336_v30 = vmul.f32 0.1, %v1022_v26  ;;  %vm1240_vm7 = vcmp.ge.f32.partialorder %v1102_v27, 0.0  ;;  %v1368_v31 = vmul.f32 0.1, %v1102_v27 }
 0x19e   : > { %v1273_v45 = vmul.f32 0.1, %v865_v38  ;;  %v1305_v46 = vmul.f32 0.1, %v945_v39  ;;  %vm1145_vm8 = vcmp.ge.f32.partialorder %v865_v38, 0.0  ;;  %vm1177_vm9 = vcmp.ge.f32.partialorder %v945_v39, 0.0 }
 0x19f   : > { %v1464_v34 = vsel %vm1208_vm6, %v1022_v26, %v1336_v30  ;;  %v1496_v35 = vsel %vm1240_vm7, %v1102_v27, %v1368_v31 }
 0x1a0   : > { %v2459_v36 = vpack.c.bf16 %v1464_v34, %v1463_v32  ;;  %v2539_v37 = vpack.c.bf16 %v1496_v35, %v1495_v33  ;;  %v1401_v53 = vsel %vm1145_vm8, %v865_v38, %v1273_v45  ;;  %v1433_v54 = vsel %vm1177_vm9, %v945_v39, %v1305_v46 }
 0x1a2   : > { %2599 = vst [vmem:[%s3029_s27 + $0x160] sm:$0xff] %v2459_v36   ;;  %v1024_v40 = vpop.f32.mrf.mxu2  ;;  %v1104_v41 = vpop.f32.mrf.mxu3 }
 0x1a3   : > { %2615 = vst [vmem:[%s3029_s27 + $0x1e0] sm:$0xff] %v2539_v37   ;;  %v866_v42 = vpop.f32.mrf.mxu0  ;;  %v946_v43 = vpop.f32.mrf.mxu1  ;;  %v1025_v51 = vadd.f32 %v3170_v44, %v1024_v40  ;;  %v1105_v52 = vadd.f32 %v3170_v44, %v1104_v41 }
 0x1a4   : > { %v867_v47 = vadd.f32 %v3170_v44, %v866_v42  ;;  %v947_v48 = vadd.f32 %v3170_v44, %v946_v43 }
 0x1a5   : > { %v1337_v61 = vmul.f32 0.1, %v1025_v51  ;;  %v1369_v62 = vmul.f32 0.1, %v1105_v52  ;;  %vm1209_vm12 = vcmp.ge.f32.partialorder %v1025_v51, 0.0  ;;  %vm1241_vm13 = vcmp.ge.f32.partialorder %v1105_v52, 0.0 }
 0x1a6   : > { %vm1146_vm10 = vcmp.ge.f32.partialorder %v867_v47, 0.0  ;;  %v1274_v49 = vmul.f32 0.1, %v867_v47  ;;  %vm1178_vm11 = vcmp.ge.f32.partialorder %v947_v48, 0.0  ;;  %v1306_v50 = vmul.f32 0.1, %v947_v48 }
 0x1a7   : > { %v1465_v5 = vsel %vm1209_vm12, %v1025_v51, %v1337_v61  ;;  %v1497_v6 = vsel %vm1241_vm13, %v1105_v52, %v1369_v62 }
 0x1a8   : > { %v1402_v55 = vsel %vm1146_vm10, %v867_v47, %v1274_v49  ;;  %v1434_v56 = vsel %vm1178_vm11, %v947_v48, %v1306_v50 }
 0x1a9   : > { %v2304_v57 = vpack.c.bf16 %v1402_v55, %v1401_v53  ;;  %v2384_v58 = vpack.c.bf16 %v1434_v56, %v1433_v54 }
 0x1aa   : > { %v1026_v59 = vpop.f32.mrf.mxu2  ;;  %v1106_v60 = vpop.f32.mrf.mxu3 }
 0x1ab   : > { %2568 = vst [vmem:[%s3029_s27 + $0x68] sm:$0xff] %v2304_v57   ;;  %v1027_v63 = vadd.f32 %v3170_v44, %v1026_v59  ;;  %v1107_v0 = vadd.f32 %v3170_v44, %v1106_v60  ;;  %v869_v1 = vpop.f32.mrf.mxu0  ;;  %v949_v2 = vpop.f32.mrf.mxu1 }
 0x1ac   : > { %2584 = vst [vmem:[%s3029_s27 + $0xe8] sm:$0xff] %v2384_v58   ;;  %v870_v11 = vadd.f32 %v3170_v44, %v869_v1  ;;  %v950_v12 = vadd.f32 %v3170_v44, %v949_v2 }
 0x1ad   : > { %vm1210_vm14 = vcmp.ge.f32.partialorder %v1027_v63, 0.0  ;;  %v1338_v3 = vmul.f32 0.1, %v1027_v63  ;;  %vm1242_vm15 = vcmp.ge.f32.partialorder %v1107_v0, 0.0  ;;  %v1370_v4 = vmul.f32 0.1, %v1107_v0 }
 0x1ae   : > { %v1275_v17 = vmul.f32 0.1, %v870_v11  ;;  %v1307_v18 = vmul.f32 0.1, %v950_v12  ;;  %vm1147_vm0 = vcmp.ge.f32.partialorder %v870_v11, 0.0  ;;  %vm1179_vm1 = vcmp.ge.f32.partialorder %v950_v12, 0.0 }
 0x1af   : > { %v1466_v7 = vsel %vm1210_vm14, %v1027_v63, %v1338_v3  ;;  %v1498_v8 = vsel %vm1242_vm15, %v1107_v0, %v1370_v4 }
 0x1b0   : > { %v2464_v9 = vpack.c.bf16 %v1466_v7, %v1465_v5  ;;  %v2544_v10 = vpack.c.bf16 %v1498_v8, %v1497_v6  ;;  %v1403_v25 = vsel %vm1147_vm0, %v870_v11, %v1275_v17  ;;  %v1435_v26 = vsel %vm1179_vm1, %v950_v12, %v1307_v18 }
 0x1b2   : > { %2600 = vst [vmem:[%s3029_s27 + $0x168] sm:$0xff] %v2464_v9   ;;  %v1029_v13 = vpop.f32.mrf.mxu2  ;;  %v1109_v14 = vpop.f32.mrf.mxu3 }
 0x1b3   : > { %2616 = vst [vmem:[%s3029_s27 + $0x1e8] sm:$0xff] %v2544_v10   ;;  %v871_v15 = vpop.f32.mrf.mxu0  ;;  %v951_v16 = vpop.f32.mrf.mxu1  ;;  %v1030_v23 = vadd.f32 %v3170_v44, %v1029_v13  ;;  %v1110_v24 = vadd.f32 %v3170_v44, %v1109_v14 }
 0x1b4   : > { %v872_v19 = vadd.f32 %v3170_v44, %v871_v15  ;;  %v952_v20 = vadd.f32 %v3170_v44, %v951_v16 }
 0x1b5   : > { %v1339_v33 = vmul.f32 0.1, %v1030_v23  ;;  %v1371_v34 = vmul.f32 0.1, %v1110_v24  ;;  %vm1211_vm4 = vcmp.ge.f32.partialorder %v1030_v23, 0.0  ;;  %vm1243_vm5 = vcmp.ge.f32.partialorder %v1110_v24, 0.0 }
 0x1b6   : > { %vm1148_vm2 = vcmp.ge.f32.partialorder %v872_v19, 0.0  ;;  %v1276_v21 = vmul.f32 0.1, %v872_v19  ;;  %vm1180_vm3 = vcmp.ge.f32.partialorder %v952_v20, 0.0  ;;  %v1308_v22 = vmul.f32 0.1, %v952_v20 }
 0x1b7   : > { %v1467_v41 = vsel %vm1211_vm4, %v1030_v23, %v1339_v33  ;;  %v1499_v42 = vsel %vm1243_vm5, %v1110_v24, %v1371_v34 }
 0x1b8   : > { %v1404_v27 = vsel %vm1148_vm2, %v872_v19, %v1276_v21  ;;  %v1436_v28 = vsel %vm1180_vm3, %v952_v20, %v1308_v22 }
 0x1b9   : > { %v2309_v29 = vpack.c.bf16 %v1404_v27, %v1403_v25  ;;  %v2389_v30 = vpack.c.bf16 %v1436_v28, %v1435_v26 }
 0x1ba   : > { %v1031_v31 = vpop.f32.mrf.mxu2  ;;  %v1111_v32 = vpop.f32.mrf.mxu3 }
 0x1bb   : > { %2569 = vst [vmem:[%s3029_s27 + $0x70] sm:$0xff] %v2309_v29   ;;  %v1032_v35 = vadd.f32 %v3170_v44, %v1031_v31  ;;  %v1112_v36 = vadd.f32 %v3170_v44, %v1111_v32  ;;  %v874_v37 = vpop.f32.mrf.mxu0  ;;  %v954_v38 = vpop.f32.mrf.mxu1 }
 0x1bc   : > { %2585 = vst [vmem:[%s3029_s27 + $0xf0] sm:$0xff] %v2389_v30   ;;  %v875_v48 = vadd.f32 %v3170_v44, %v874_v37  ;;  %v955_v49 = vadd.f32 %v3170_v44, %v954_v38 }
 0x1bd   : > { %vm1212_vm6 = vcmp.ge.f32.partialorder %v1032_v35, 0.0  ;;  %v1340_v39 = vmul.f32 0.1, %v1032_v35  ;;  %vm1244_vm7 = vcmp.ge.f32.partialorder %v1112_v36, 0.0  ;;  %v1372_v40 = vmul.f32 0.1, %v1112_v36 }
 0x1be   : > { %v1277_v54 = vmul.f32 0.1, %v875_v48  ;;  %v1309_v55 = vmul.f32 0.1, %v955_v49  ;;  %vm1149_vm8 = vcmp.ge.f32.partialorder %v875_v48, 0.0  ;;  %vm1181_vm9 = vcmp.ge.f32.partialorder %v955_v49, 0.0 }
 0x1bf   : > { %v1468_v43 = vsel %vm1212_vm6, %v1032_v35, %v1340_v39  ;;  %v1500_v45 = vsel %vm1244_vm7, %v1112_v36, %v1372_v40 }
 0x1c0   : > { %v2469_v46 = vpack.c.bf16 %v1468_v43, %v1467_v41  ;;  %v2549_v47 = vpack.c.bf16 %v1500_v45, %v1499_v42  ;;  %v1405_v62 = vsel %vm1149_vm8, %v875_v48, %v1277_v54  ;;  %v1437_v63 = vsel %vm1181_vm9, %v955_v49, %v1309_v55 }
 0x1c2   : > { %2601 = vst [vmem:[%s3029_s27 + $0x170] sm:$0xff] %v2469_v46   ;;  %v1034_v50 = vpop.f32.mrf.mxu2  ;;  %v1114_v51 = vpop.f32.mrf.mxu3 }
 0x1c3   : > { %2617 = vst [vmem:[%s3029_s27 + $0x1f0] sm:$0xff] %v2549_v47   ;;  %v876_v52 = vpop.f32.mrf.mxu0  ;;  %v956_v53 = vpop.f32.mrf.mxu1  ;;  %v1035_v60 = vadd.f32 %v3170_v44, %v1034_v50  ;;  %v1115_v61 = vadd.f32 %v3170_v44, %v1114_v51 }
 0x1c4   : > { %v877_v56 = vadd.f32 %v3170_v44, %v876_v52  ;;  %v957_v57 = vadd.f32 %v3170_v44, %v956_v53 }
 0x1c5   : > { %v1341_v6 = vmul.f32 0.1, %v1035_v60  ;;  %v1373_v7 = vmul.f32 0.1, %v1115_v61  ;;  %vm1213_vm12 = vcmp.ge.f32.partialorder %v1035_v60, 0.0  ;;  %vm1245_vm13 = vcmp.ge.f32.partialorder %v1115_v61, 0.0 }
 0x1c6   : > { %vm1150_vm10 = vcmp.ge.f32.partialorder %v877_v56, 0.0  ;;  %v1278_v58 = vmul.f32 0.1, %v877_v56  ;;  %vm1182_vm11 = vcmp.ge.f32.partialorder %v957_v57, 0.0  ;;  %v1310_v59 = vmul.f32 0.1, %v957_v57 }
 0x1c7   : > { %v1469_v12 = vsel %vm1213_vm12, %v1035_v60, %v1341_v6  ;;  %v1501_v13 = vsel %vm1245_vm13, %v1115_v61, %v1373_v7 }
 0x1c8   : > { %v1406_v0 = vsel %vm1150_vm10, %v877_v56, %v1278_v58  ;;  %v1438_v1 = vsel %vm1182_vm11, %v957_v57, %v1310_v59 }
 0x1c9   : > { %v2314_v2 = vpack.c.bf16 %v1406_v0, %v1405_v62  ;;  %v2394_v3 = vpack.c.bf16 %v1438_v1, %v1437_v63 }
 0x1ca   : > { %v1036_v4 = vpop.f32.mrf.mxu2  ;;  %v1116_v5 = vpop.f32.mrf.mxu3 }
 0x1cb   : > { %2570 = vst [vmem:[%s3029_s27 + $0x78] sm:$0xff] %v2314_v2   ;;  %v1037_v8 = vadd.f32 %v3170_v44, %v1036_v4  ;;  %v1117_v9 = vadd.f32 %v3170_v44, %v1116_v5 }
 0x1cc   : > { %2586 = vst [vmem:[%s3029_s27 + $0xf8] sm:$0xff] %v2394_v3  }
 0x1cd   : > { %vm1214_vm14 = vcmp.ge.f32.partialorder %v1037_v8, 0.0  ;;  %v1342_v10 = vmul.f32 0.1, %v1037_v8  ;;  %vm1246_vm15 = vcmp.ge.f32.partialorder %v1117_v9, 0.0  ;;  %v1374_v11 = vmul.f32 0.1, %v1117_v9 }
 0x1cf   : > { %v1470_v14 = vsel %vm1214_vm14, %v1037_v8, %v1342_v10  ;;  %v1502_v15 = vsel %vm1246_vm15, %v1117_v9, %v1374_v11 }
 0x1d0   : > { %v2474_v16 = vpack.c.bf16 %v1470_v14, %v1469_v12  ;;  %v2554_v17 = vpack.c.bf16 %v1502_v15, %v1501_v13 }
 0x1d2   : > { %2602 = vst [vmem:[%s3029_s27 + $0x178] sm:$0xff] %v2474_v16  }
 0x1d3   : > { %2618 = vst [vmem:[%s3029_s27 + $0x1f8] sm:$0xff] %v2554_v17  }
 0x1d4   : > { %2793 = shalt.err (!%p2790_p10)
}
 0x1d5   : > { %s2841_s6 = smov 64   ;;  %s2842_s23 = smov 4  }
 0x1d6   : > { %2649 = dma.vmem_to_hbm [thread:$0]  (%p2932_p3), %s1773_s29, 8192, %s1775_s30, %s1760_s7, %s2841_s6, %s2841_s6, %s2842_s23  }
 0x1d7 PF: > { %s1789_s27 = sand.u32 1, %s2824_s12   ;;  %p3292_p12 = scmp.ge.s32.totalorder %s2836_s15, 2 }
 0x1d8   : > { %s1790_s28 = scalar_lea.sflag [#allocation4], %s1789_s27 }
 0x1d9   : > { %p2660_p13 = pnand %p3292_p12, %p2898_p6 }
 0x1db   : > { %p2661_p0 = pneg %p2660_p13 }
 0x1dd   : > { %2819 = dma.done.wait (%p2661_p0), %s1790_s28, 8192  }
 0x1de   : > { %2821 = vsyncadd (%p2661_p0), %s1790_s28, 4294959104  ;;  %p17_p5 = scmp.ge.s32.totalorder %s2916_s26, 4   ;;  %s3293_s12 = smov %s2828_s13 }
 0x1df   : > { %s3294_s13 = smov %s2832_s14  ;;  %s3295_s14 = smov %s2928_s4 }
 0x1e0   : > { %s3296_s15 = smov %s2916_s26  ;;  %19 = sbr.rel (!%p17_p5) target bundleno = 6 (0x6), region = 81 }
 0x1e5   :  { %1796 = vsyncpa [#allocation3], 1 }
 0x1e6   :  { %1798 = vsyncpa [#allocation3 + $0x1], 1 }
 0x1e7   :  { %1799 = vsyncpa [#allocation6], 1 }
 0x1e8   :  { %1800 = vsyncpa [#allocation4], 1 }
 0x1e9   :  { %1802 = vsyncpa [#allocation4 + $0x1], 1 }

</bundles_post_ra>
